<compile_context>
chip_gen: v7x
topology: tpu7x:2x2x1
jax: 0.10.0
libtpu: 0.0.40
codegen_flags: <defaults>
</compile_context>

<pallas_src>
import functools

import jax
import jax.numpy as jnp
from jax import lax
from jax.experimental import pallas as pl
from jax.experimental.pallas import tpu as pltpu

EMB_DIM = 100          # matches nn.Embedding(..., 100)
PADDED_DIM = 128       # zero-padded to a full lane width (exact for dot products)
MAX_TILE_B = 32        # batch tile (amortizes per-grid-step overhead)
# Resident-table budget (bytes of VMEM the two tables may occupy once padded to
# (V, 1, 128) -> one (8, 128) f32 tile per row, and double-buffered by the
# pipeline).  Conservative for v7x's 64 MiB physical VMEM.
RESIDENT_TABLE_BUDGET = 16 * 1024 * 1024


def pad_embedding_table(table, padded_dim=PADDED_DIM):
    """Zero-pad the embedding dim once at init (exact for dot products)."""
    v, d = table.shape
    if d == padded_dim:
        return table
    pad = jnp.zeros((v, padded_dim - d), table.dtype)
    return jnp.concatenate([table, pad], axis=1)


def _choose_tile_b(batch):
    """Batch tile: multiple of 8 (sublanes), capped at MAX_TILE_B."""
    rounded = ((batch + 7) // 8) * 8
    return min(MAX_TILE_B, rounded)


def _pad_rows(x, rows):
    if x.shape[0] == rows:
        return x
    pad_shape = (rows - x.shape[0],) + x.shape[1:]
    return jnp.concatenate([x, jnp.zeros(pad_shape, x.dtype)], axis=0)


def _fwd_kernel(uid_ref, nid_ref, *refs, tb, n_cand, real_b, num_tiles, with_loss):
    if with_loss:
        (user_tab, item_tab, tgt_ref,
         loss_ref, scores_ref,
         u_buf, n_buf, loss_acc) = refs
    else:
        (user_tab, item_tab,
         scores_ref,
         u_buf, n_buf) = refs

    t = pl.program_id(0)
    base = t * tb

    # ---- in-VMEM gather: tables are resident, indices come from SMEM ----
    # Scratch offsets are static (Python loops, tb*(1+n_cand) <= 288 stmts);
    # only the table row index (leading, untiled axis) is dynamic.
    for r in range(tb):
        u_buf[pl.ds(r, 1), :] = user_tab[uid_ref[base + r]]          # (1, Dp)
        for c in range(n_cand):
            k = r * n_cand + c
            n_buf[r, pl.ds(c, 1), :] = item_tab[nid_ref[base * n_cand + k]]

    # ---- compute: scores[b, n] = <news[b, n, :], user[b, :]>  (VPU + XLU) ----
    user = u_buf[...]                                   # [TB, Dp]     f32
    news = n_buf[...]                                   # [TB, N, Dp]  f32
    scores = jnp.sum(news * user[:, None, :], axis=-1)  # [TB, N]
    scores_ref[...] = scores.astype(scores_ref.dtype)

    if with_loss:
        # nn.CrossEntropyLoss (mean over the REAL batch rows):
        #   logsumexp(scores_b) - scores_b[target_b]
        m = jnp.max(scores, axis=-1, keepdims=True)                              # [TB, 1]
        lse = m + jnp.log(jnp.sum(jnp.exp(scores - m), axis=-1, keepdims=True))  # [TB, 1]
        col = lax.broadcasted_iota(jnp.int32, (tb, n_cand), 1)
        onehot = (col == tgt_ref[...]).astype(jnp.float32)                       # [TB, N]
        tgt_score = jnp.sum(scores * onehot, axis=-1, keepdims=True)             # [TB, 1]
        row = lax.broadcasted_iota(jnp.int32, (tb, 1), 0) + base                 # global row idx
        valid = (row < real_b).astype(jnp.float32)                               # mask padded rows
        tile_loss = jnp.sum((lse - tgt_score) * valid).reshape(1, 1)

        @pl.when(t == 0)
        def _():
            loss_acc[...] = jnp.zeros_like(loss_acc)

        loss_acc[...] += tile_loss

        @pl.when(t == num_tiles - 1)
        def _():
            loss_ref[...] = loss_acc[...] * (1.0 / float(real_b))


@functools.lru_cache(maxsize=None)
def _build_call(b_pad, tb, n_cand, dp, vu, vi, real_b, with_loss):
    num_tiles = b_pad // tb

    kernel = functools.partial(
        _fwd_kernel, tb=tb, n_cand=n_cand, real_b=real_b,
        num_tiles=num_tiles, with_loss=with_loss)

    # Whole tables resident in VMEM (constant index map -> copied in once).
    in_specs = [
        pl.BlockSpec((vu, 1, dp), lambda t, uid, nid: (0, 0, 0)),   # user table
        pl.BlockSpec((vi, 1, dp), lambda t, uid, nid: (0, 0, 0)),   # item table
    ]
    if with_loss:
        in_specs.append(pl.BlockSpec((tb, 1), lambda t, uid, nid: (t, 0)))  # targets

    scores_spec = pl.BlockSpec((tb, n_cand), lambda t, uid, nid: (t, 0))
    scores_shape = jax.ShapeDtypeStruct((b_pad, n_cand), jnp.float32)

    scratch_shapes = [
        pltpu.VMEM((tb, dp), jnp.float32),            # gathered user rows
        pltpu.VMEM((tb, n_cand, dp), jnp.float32),    # gathered news rows
    ]
    if with_loss:
        out_specs = (pl.BlockSpec((1, 1), lambda t, uid, nid: (0, 0)), scores_spec)
        out_shape = (jax.ShapeDtypeStruct((1, 1), jnp.float32), scores_shape)
        scratch_shapes.append(pltpu.VMEM((1, 1), jnp.float32))    # loss accumulator
    else:
        out_specs = scores_spec
        out_shape = scores_shape

    # VMEM budget: tables (one (8,128) f32 tile per row, double-buffered) +
    # gather scratch + headroom.
    resident_bytes = (vu + vi) * 8 * dp * 4
    scratch_bytes = (tb + tb * n_cand) * dp * 4
    vmem_limit = int(max(32 * 1024 * 1024,
                         2 * resident_bytes + scratch_bytes + (8 << 20)))

    grid_spec = pltpu.PrefetchScalarGridSpec(
        num_scalar_prefetch=2,                # uid, flattened nid -> SMEM
        grid=(num_tiles,),
        in_specs=in_specs,
        out_specs=out_specs,
        scratch_shapes=scratch_shapes,
    )
    return pl.pallas_call(
        kernel,
        grid_spec=grid_spec,
        out_shape=out_shape,
        compiler_params=pltpu.CompilerParams(
            dimension_semantics=("arbitrary",),
            vmem_limit_bytes=vmem_limit,
        ),
    )


def _jax_fallback(user_table, item_table, uid, nid, targets, compute_loss):
    uvec = jnp.take(user_table, uid.astype(jnp.int32), axis=0)
    nvec = jnp.take(item_table, nid.astype(jnp.int32), axis=0)
    scores = jnp.einsum("bnd,bd->bn", nvec, uvec)
    if not compute_loss:
        return scores
    lse = jax.scipy.special.logsumexp(scores, axis=-1)
    tgt = targets.astype(jnp.int32)
    tgt_scores = jnp.take_along_axis(scores, tgt[:, None], axis=1)[:, 0]
    return jnp.mean(lse - tgt_scores), scores


def model_train_forward(user_table, item_table, uid, nid, targets=None,
                        compute_loss=True):
    """JAX/Pallas equivalent of ModelTrain.forward(uid, nid, targets).

    Tables must already be zero-padded to PADDED_DIM columns (pad once at init).
    """
    assert user_table.shape[-1] == item_table.shape[-1]
    B, N = nid.shape
    dp = item_table.shape[-1]
    vu, vi = user_table.shape[0], item_table.shape[0]

    resident_bytes = (vu + vi) * 8 * dp * 4
    if resident_bytes > RESIDENT_TABLE_BUDGET:
        # TODO(synk): add a double-buffered HBM DMA-gather Pallas kernel for
        # embedding tables that exceed the VMEM budget; plain-JAX fallback here.
        return _jax_fallback(user_table, item_table, uid, nid, targets, compute_loss)

    tb = _choose_tile_b(B)
    b_pad = ((B + tb - 1) // tb) * tb

    uid_i = _pad_rows(uid.astype(jnp.int32).reshape(B), b_pad)
    nid_flat = _pad_rows(nid.astype(jnp.int32).reshape(B, N), b_pad).reshape(b_pad * N)
    user_tab3 = user_table.reshape(vu, 1, dp)
    item_tab3 = item_table.reshape(vi, 1, dp)

    call = _build_call(b_pad, tb, N, dp, vu, vi, B, bool(compute_loss))
    if compute_loss:
        tgt2d = _pad_rows(targets.astype(jnp.int32).reshape(B, 1), b_pad)
        loss, scores = call(uid_i, nid_flat, user_tab3, item_tab3, tgt2d)
        return loss[0, 0], scores[:B]
    scores = call(uid_i, nid_flat, user_tab3, item_tab3)
    return scores[:B]


def _reference(user_table_raw, item_table_raw, uid, nid, targets):
    uvec = user_table_raw[uid]
    nvec = item_table_raw[nid]
    scores = jnp.einsum("bnd,bd->bn", nvec, uvec)
    lse = jax.scipy.special.logsumexp(scores, axis=-1)
    loss = jnp.mean(lse - scores[jnp.arange(scores.shape[0]), targets])
    return loss, scores


if __name__ == "__main__":
    users_num, items_num = 10, 20
    N = 8

    key = jax.random.PRNGKey(0)
    ks = jax.random.split(key, 11)

    # "nn.Embedding" tables (init ~ N(0, 1)), zero-padded 100 -> 128 once at init.
    user_table_raw = jax.random.normal(ks[0], (users_num + 1, EMB_DIM), jnp.float32)
    item_table_raw = jax.random.normal(ks[1], (items_num + 1, EMB_DIM), jnp.float32)
    user_table = pad_embedding_table(user_table_raw)
    item_table = pad_embedding_table(item_table_raw)

    # --- batch=2: pads to one 8-row tile; exercises the padded-row loss mask ---
    B = 2
    uid = jax.random.randint(ks[2], (B,), 0, users_num + 1, dtype=jnp.int32)
    nid = jax.random.randint(ks[3], (B, N), 0, items_num + 1, dtype=jnp.int32)
    targets = jax.random.randint(ks[4], (B,), 0, N, dtype=jnp.int32)

    loss, scores = model_train_forward(user_table, item_table, uid, nid, targets)
    scores_only = model_train_forward(user_table, item_table, uid, nid,
                                      compute_loss=False)
    jax.block_until_ready((loss, scores, scores_only))

    ref_loss, ref_scores = _reference(user_table_raw, item_table_raw, uid, nid, targets)
    assert jnp.allclose(scores, ref_scores, rtol=1e-5, atol=1e-5)
    assert jnp.allclose(scores_only, ref_scores, rtol=1e-5, atol=1e-5)
    assert jnp.allclose(loss, ref_loss, rtol=1e-5, atol=1e-5)

    # --- batch=16: one 16-row tile (TB * N == 128) ---
    B2 = 16
    uid2 = jax.random.randint(ks[5], (B2,), 0, users_num + 1, dtype=jnp.int32)
    nid2 = jax.random.randint(ks[6], (B2, N), 0, items_num + 1, dtype=jnp.int32)
    targets2 = jax.random.randint(ks[7], (B2,), 0, N, dtype=jnp.int32)

    loss2, scores2 = model_train_forward(user_table, item_table, uid2, nid2, targets2)
    jax.block_until_ready((loss2, scores2))

    ref_loss2, ref_scores2 = _reference(user_table_raw, item_table_raw, uid2, nid2, targets2)
    assert jnp.allclose(scores2, ref_scores2, rtol=1e-5, atol=1e-5)
    assert jnp.allclose(loss2, ref_loss2, rtol=1e-5, atol=1e-5)

    # --- batch=40: two 32-row tiles + padding; multi-tile loss accumulation ---
    B3 = 40
    uid3 = jax.random.randint(ks[8], (B3,), 0, users_num + 1, dtype=jnp.int32)
    nid3 = jax.random.randint(ks[9], (B3, N), 0, items_num + 1, dtype=jnp.int32)
    targets3 = jax.random.randint(ks[10], (B3,), 0, N, dtype=jnp.int32)

    loss3, scores3 = model_train_forward(user_table, item_table, uid3, nid3, targets3)
    jax.block_until_ready((loss3, scores3))

    ref_loss3, ref_scores3 = _reference(user_table_raw, item_table_raw, uid3, nid3, targets3)
    assert jnp.allclose(scores3, ref_scores3, rtol=1e-5, atol=1e-5)
    assert jnp.allclose(loss3, ref_loss3, rtol=1e-5, atol=1e-5)

    print("KERNEL_OK")
</pallas_src>

<mosaic_0001>
module attributes {stable_mosaic.version = 11 : i64} {
  func.func @_fwd_kernel(%arg0: i32, %arg1: memref<8xi32, #tpu.memory_space<smem>>, %arg2: memref<64xi32, #tpu.memory_space<smem>>, %arg3: memref<11x1x128xf32, #tpu.memory_space<vmem>>, %arg4: memref<21x1x128xf32, #tpu.memory_space<vmem>>, %arg5: memref<8x1xi32, #tpu.memory_space<vmem>>, %arg6: memref<1x1xf32, #tpu.memory_space<vmem>>, %arg7: memref<8x8xf32, #tpu.memory_space<vmem>>, %arg8: memref<8x128xf32, #tpu.memory_space<vmem>>, %arg9: memref<8x8x128xf32, #tpu.memory_space<vmem>>, %arg10: memref<1x1xf32, #tpu.memory_space<vmem>>) attributes {dimension_semantics = [#tpu.dimension_semantics<arbitrary>], iteration_bounds = array<i64: 1>, scalar_prefetch = 2 : i64, scratch_operands = 3 : i64, tpu.core_type = #tpu.core_type<tc>, window_params = [{pipeline_mode = #tpu.pipeline_mode<synchronous>, transform_indices = @transform_0, window_bounds = array<i64: 11, 1, 128>}, {pipeline_mode = #tpu.pipeline_mode<synchronous>, transform_indices = @transform_1, window_bounds = array<i64: 21, 1, 128>}, {transform_indices = @transform_2, window_bounds = array<i64: 8, 1>}, {pipeline_mode = #tpu.pipeline_mode<synchronous>, transform_indices = @transform_3, window_bounds = array<i64: 1, 1>}, {transform_indices = @transform_4, window_bounds = array<i64: 8, 8>}]} {
    %c8_i32 = arith.constant 8 : i32
    %0 = arith.muli %arg0, %c8_i32 : i32
    %c0_i32 = arith.constant 0 : i32
    %1 = arith.addi %0, %c0_i32 : i32
    %2 = arith.index_cast %1 : i32 to index
    %3 = memref.load %arg1[%2] : memref<8xi32, #tpu.memory_space<smem>>
    %4 = arith.index_cast %3 : i32 to index
    %c0 = arith.constant 0 : index
    %c0_0 = arith.constant 0 : index
    %5 = vector.load %arg3[%4, %c0, %c0_0] : memref<11x1x128xf32, #tpu.memory_space<vmem>>, vector<1x1x128xf32>
    %6 = vector.shape_cast %5 : vector<1x1x128xf32> to vector<1x128xf32>
    %c0_1 = arith.constant 0 : index
    %c0_2 = arith.constant 0 : index
    %7 = vector.load %arg8[%c0_1, %c0_2] : memref<8x128xf32, #tpu.memory_space<vmem>>, vector<1x128xf32>
    tpu.vector_store %arg8[%c0_1, %c0_2], %6 {strides = array<i32>} : memref<8x128xf32, #tpu.memory_space<vmem>>, vector<1x128xf32>,
    %c8_i32_3 = arith.constant 8 : i32
    %8 = arith.muli %0, %c8_i32_3 : i32
    %c0_i32_4 = arith.constant 0 : i32
    %9 = arith.addi %8, %c0_i32_4 : i32
    %10 = arith.index_cast %9 : i32 to index
    %11 = memref.load %arg2[%10] : memref<64xi32, #tpu.memory_space<smem>>
    %12 = arith.index_cast %11 : i32 to index
    %c0_5 = arith.constant 0 : index
    %c0_6 = arith.constant 0 : index
    %13 = vector.load %arg4[%12, %c0_5, %c0_6] : memref<21x1x128xf32, #tpu.memory_space<vmem>>, vector<1x1x128xf32>
    %14 = vector.shape_cast %13 : vector<1x1x128xf32> to vector<1x128xf32>
    %c0_7 = arith.constant 0 : index
    %c0_8 = arith.constant 0 : index
    %c0_9 = arith.constant 0 : index
    %15 = vector.load %arg9[%c0_7, %c0_8, %c0_9] : memref<8x8x128xf32, #tpu.memory_space<vmem>>, vector<1x1x128xf32>
    %16 = vector.shape_cast %15 : vector<1x1x128xf32> to vector<1x128xf32>
    %17 = vector.shape_cast %14 : vector<1x128xf32> to vector<1x1x128xf32>
    tpu.vector_store %arg9[%c0_7, %c0_8, %c0_9], %17 {strides = array<i32>} : memref<8x8x128xf32, #tpu.memory_space<vmem>>, vector<1x1x128xf32>,
    %c8_i32_10 = arith.constant 8 : i32
    %18 = arith.muli %0, %c8_i32_10 : i32
    %c1_i32 = arith.constant 1 : i32
    %19 = arith.addi %18, %c1_i32 : i32
    %20 = arith.index_cast %19 : i32 to index
    %21 = memref.load %arg2[%20] : memref<64xi32, #tpu.memory_space<smem>>
    %22 = arith.index_cast %21 : i32 to index
    %c0_11 = arith.constant 0 : index
    %c0_12 = arith.constant 0 : index
    %23 = vector.load %arg4[%22, %c0_11, %c0_12] : memref<21x1x128xf32, #tpu.memory_space<vmem>>, vector<1x1x128xf32>
    %24 = vector.shape_cast %23 : vector<1x1x128xf32> to vector<1x128xf32>
    %c0_13 = arith.constant 0 : index
    %c1 = arith.constant 1 : index
    %c0_14 = arith.constant 0 : index
    %25 = vector.load %arg9[%c0_13, %c1, %c0_14] : memref<8x8x128xf32, #tpu.memory_space<vmem>>, vector<1x1x128xf32>
    %26 = vector.shape_cast %25 : vector<1x1x128xf32> to vector<1x128xf32>
    %27 = vector.shape_cast %24 : vector<1x128xf32> to vector<1x1x128xf32>
    tpu.vector_store %arg9[%c0_13, %c1, %c0_14], %27 {strides = array<i32>} : memref<8x8x128xf32, #tpu.memory_space<vmem>>, vector<1x1x128xf32>,
    %c8_i32_15 = arith.constant 8 : i32
    %28 = arith.muli %0, %c8_i32_15 : i32
    %c2_i32 = arith.constant 2 : i32
    %29 = arith.addi %28, %c2_i32 : i32
    %30 = arith.index_cast %29 : i32 to index
    %31 = memref.load %arg2[%30] : memref<64xi32, #tpu.memory_space<smem>>
    %32 = arith.index_cast %31 : i32 to index
    %c0_16 = arith.constant 0 : index
    %c0_17 = arith.constant 0 : index
    %33 = vector.load %arg4[%32, %c0_16, %c0_17] : memref<21x1x128xf32, #tpu.memory_space<vmem>>, vector<1x1x128xf32>
    %34 = vector.shape_cast %33 : vector<1x1x128xf32> to vector<1x128xf32>
    %c0_18 = arith.constant 0 : index
    %c2 = arith.constant 2 : index
    %c0_19 = arith.constant 0 : index
    %35 = vector.load %arg9[%c0_18, %c2, %c0_19] : memref<8x8x128xf32, #tpu.memory_space<vmem>>, vector<1x1x128xf32>
    %36 = vector.shape_cast %35 : vector<1x1x128xf32> to vector<1x128xf32>
    %37 = vector.shape_cast %34 : vector<1x128xf32> to vector<1x1x128xf32>
    tpu.vector_store %arg9[%c0_18, %c2, %c0_19], %37 {strides = array<i32>} : memref<8x8x128xf32, #tpu.memory_space<vmem>>, vector<1x1x128xf32>,
    %c8_i32_20 = arith.constant 8 : i32
    %38 = arith.muli %0, %c8_i32_20 : i32
    %c3_i32 = arith.constant 3 : i32
    %39 = arith.addi %38, %c3_i32 : i32
    %40 = arith.index_cast %39 : i32 to index
    %41 = memref.load %arg2[%40] : memref<64xi32, #tpu.memory_space<smem>>
    %42 = arith.index_cast %41 : i32 to index
    %c0_21 = arith.constant 0 : index
    %c0_22 = arith.constant 0 : index
    %43 = vector.load %arg4[%42, %c0_21, %c0_22] : memref<21x1x128xf32, #tpu.memory_space<vmem>>, vector<1x1x128xf32>
    %44 = vector.shape_cast %43 : vector<1x1x128xf32> to vector<1x128xf32>
    %c0_23 = arith.constant 0 : index
    %c3 = arith.constant 3 : index
    %c0_24 = arith.constant 0 : index
    %45 = vector.load %arg9[%c0_23, %c3, %c0_24] : memref<8x8x128xf32, #tpu.memory_space<vmem>>, vector<1x1x128xf32>
    %46 = vector.shape_cast %45 : vector<1x1x128xf32> to vector<1x128xf32>
    %47 = vector.shape_cast %44 : vector<1x128xf32> to vector<1x1x128xf32>
    tpu.vector_store %arg9[%c0_23, %c3, %c0_24], %47 {strides = array<i32>} : memref<8x8x128xf32, #tpu.memory_space<vmem>>, vector<1x1x128xf32>,
    %c8_i32_25 = arith.constant 8 : i32
    %48 = arith.muli %0, %c8_i32_25 : i32
    %c4_i32 = arith.constant 4 : i32
    %49 = arith.addi %48, %c4_i32 : i32
    %50 = arith.index_cast %49 : i32 to index
    %51 = memref.load %arg2[%50] : memref<64xi32, #tpu.memory_space<smem>>
    %52 = arith.index_cast %51 : i32 to index
    %c0_26 = arith.constant 0 : index
    %c0_27 = arith.constant 0 : index
    %53 = vector.load %arg4[%52, %c0_26, %c0_27] : memref<21x1x128xf32, #tpu.memory_space<vmem>>, vector<1x1x128xf32>
    %54 = vector.shape_cast %53 : vector<1x1x128xf32> to vector<1x128xf32>
    %c0_28 = arith.constant 0 : index
    %c4 = arith.constant 4 : index
    %c0_29 = arith.constant 0 : index
    %55 = vector.load %arg9[%c0_28, %c4, %c0_29] : memref<8x8x128xf32, #tpu.memory_space<vmem>>, vector<1x1x128xf32>
    %56 = vector.shape_cast %55 : vector<1x1x128xf32> to vector<1x128xf32>
    %57 = vector.shape_cast %54 : vector<1x128xf32> to vector<1x1x128xf32>
    tpu.vector_store %arg9[%c0_28, %c4, %c0_29], %57 {strides = array<i32>} : memref<8x8x128xf32, #tpu.memory_space<vmem>>, vector<1x1x128xf32>,
    %c8_i32_30 = arith.constant 8 : i32
    %58 = arith.muli %0, %c8_i32_30 : i32
    %c5_i32 = arith.constant 5 : i32
    %59 = arith.addi %58, %c5_i32 : i32
    %60 = arith.index_cast %59 : i32 to index
    %61 = memref.load %arg2[%60] : memref<64xi32, #tpu.memory_space<smem>>
    %62 = arith.index_cast %61 : i32 to index
    %c0_31 = arith.constant 0 : index
    %c0_32 = arith.constant 0 : index
    %63 = vector.load %arg4[%62, %c0_31, %c0_32] : memref<21x1x128xf32, #tpu.memory_space<vmem>>, vector<1x1x128xf32>
    %64 = vector.shape_cast %63 : vector<1x1x128xf32> to vector<1x128xf32>
    %c0_33 = arith.constant 0 : index
    %c5 = arith.constant 5 : index
    %c0_34 = arith.constant 0 : index
    %65 = vector.load %arg9[%c0_33, %c5, %c0_34] : memref<8x8x128xf32, #tpu.memory_space<vmem>>, vector<1x1x128xf32>
    %66 = vector.shape_cast %65 : vector<1x1x128xf32> to vector<1x128xf32>
    %67 = vector.shape_cast %64 : vector<1x128xf32> to vector<1x1x128xf32>
    tpu.vector_store %arg9[%c0_33, %c5, %c0_34], %67 {strides = array<i32>} : memref<8x8x128xf32, #tpu.memory_space<vmem>>, vector<1x1x128xf32>,
    %c8_i32_35 = arith.constant 8 : i32
    %68 = arith.muli %0, %c8_i32_35 : i32
    %c6_i32 = arith.constant 6 : i32
    %69 = arith.addi %68, %c6_i32 : i32
    %70 = arith.index_cast %69 : i32 to index
    %71 = memref.load %arg2[%70] : memref<64xi32, #tpu.memory_space<smem>>
    %72 = arith.index_cast %71 : i32 to index
    %c0_36 = arith.constant 0 : index
    %c0_37 = arith.constant 0 : index
    %73 = vector.load %arg4[%72, %c0_36, %c0_37] : memref<21x1x128xf32, #tpu.memory_space<vmem>>, vector<1x1x128xf32>
    %74 = vector.shape_cast %73 : vector<1x1x128xf32> to vector<1x128xf32>
    %c0_38 = arith.constant 0 : index
    %c6 = arith.constant 6 : index
    %c0_39 = arith.constant 0 : index
    %75 = vector.load %arg9[%c0_38, %c6, %c0_39] : memref<8x8x128xf32, #tpu.memory_space<vmem>>, vector<1x1x128xf32>
    %76 = vector.shape_cast %75 : vector<1x1x128xf32> to vector<1x128xf32>
    %77 = vector.shape_cast %74 : vector<1x128xf32> to vector<1x1x128xf32>
    tpu.vector_store %arg9[%c0_38, %c6, %c0_39], %77 {strides = array<i32>} : memref<8x8x128xf32, #tpu.memory_space<vmem>>, vector<1x1x128xf32>,
    %c8_i32_40 = arith.constant 8 : i32
    %78 = arith.muli %0, %c8_i32_40 : i32
    %c7_i32 = arith.constant 7 : i32
    %79 = arith.addi %78, %c7_i32 : i32
    %80 = arith.index_cast %79 : i32 to index
    %81 = memref.load %arg2[%80] : memref<64xi32, #tpu.memory_space<smem>>
    %82 = arith.index_cast %81 : i32 to index
    %c0_41 = arith.constant 0 : index
    %c0_42 = arith.constant 0 : index
    %83 = vector.load %arg4[%82, %c0_41, %c0_42] : memref<21x1x128xf32, #tpu.memory_space<vmem>>, vector<1x1x128xf32>
    %84 = vector.shape_cast %83 : vector<1x1x128xf32> to vector<1x128xf32>
    %c0_43 = arith.constant 0 : index
    %c7 = arith.constant 7 : index
    %c0_44 = arith.constant 0 : index
    %85 = vector.load %arg9[%c0_43, %c7, %c0_44] : memref<8x8x128xf32, #tpu.memory_space<vmem>>, vector<1x1x128xf32>
    %86 = vector.shape_cast %85 : vector<1x1x128xf32> to vector<1x128xf32>
    %87 = vector.shape_cast %84 : vector<1x128xf32> to vector<1x1x128xf32>
    tpu.vector_store %arg9[%c0_43, %c7, %c0_44], %87 {strides = array<i32>} : memref<8x8x128xf32, #tpu.memory_space<vmem>>, vector<1x1x128xf32>,
    %c1_i32_45 = arith.constant 1 : i32
    %88 = arith.addi %0, %c1_i32_45 : i32
    %89 = arith.index_cast %88 : i32 to index
    %90 = memref.load %arg1[%89] : memref<8xi32, #tpu.memory_space<smem>>
    %91 = arith.index_cast %90 : i32 to index
    %c0_46 = arith.constant 0 : index
    %c0_47 = arith.constant 0 : index
    %92 = vector.load %arg3[%91, %c0_46, %c0_47] : memref<11x1x128xf32, #tpu.memory_space<vmem>>, vector<1x1x128xf32>
    %93 = vector.shape_cast %92 : vector<1x1x128xf32> to vector<1x128xf32>
    %c1_48 = arith.constant 1 : index
    %c0_49 = arith.constant 0 : index
    %94 = vector.load %arg8[%c1_48, %c0_49] : memref<8x128xf32, #tpu.memory_space<vmem>>, vector<1x128xf32>
    tpu.vector_store %arg8[%c1_48, %c0_49], %93 {strides = array<i32>} : memref<8x128xf32, #tpu.memory_space<vmem>>, vector<1x128xf32>,
    %c8_i32_50 = arith.constant 8 : i32
    %95 = arith.muli %0, %c8_i32_50 : i32
    %c8_i32_51 = arith.constant 8 : i32
    %96 = arith.addi %95, %c8_i32_51 : i32
    %97 = arith.index_cast %96 : i32 to index
    %98 = memref.load %arg2[%97] : memref<64xi32, #tpu.memory_space<smem>>
    %99 = arith.index_cast %98 : i32 to index
    %c0_52 = arith.constant 0 : index
    %c0_53 = arith.constant 0 : index
    %100 = vector.load %arg4[%99, %c0_52, %c0_53] : memref<21x1x128xf32, #tpu.memory_space<vmem>>, vector<1x1x128xf32>
    %101 = vector.shape_cast %100 : vector<1x1x128xf32> to vector<1x128xf32>
    %c1_54 = arith.constant 1 : index
    %c0_55 = arith.constant 0 : index
    %c0_56 = arith.constant 0 : index
    %102 = vector.load %arg9[%c1_54, %c0_55, %c0_56] : memref<8x8x128xf32, #tpu.memory_space<vmem>>, vector<1x1x128xf32>
    %103 = vector.shape_cast %102 : vector<1x1x128xf32> to vector<1x128xf32>
    %104 = vector.shape_cast %101 : vector<1x128xf32> to vector<1x1x128xf32>
    tpu.vector_store %arg9[%c1_54, %c0_55, %c0_56], %104 {strides = array<i32>} : memref<8x8x128xf32, #tpu.memory_space<vmem>>, vector<1x1x128xf32>,
    %c8_i32_57 = arith.constant 8 : i32
    %105 = arith.muli %0, %c8_i32_57 : i32
    %c9_i32 = arith.constant 9 : i32
    %106 = arith.addi %105, %c9_i32 : i32
    %107 = arith.index_cast %106 : i32 to index
    %108 = memref.load %arg2[%107] : memref<64xi32, #tpu.memory_space<smem>>
    %109 = arith.index_cast %108 : i32 to index
    %c0_58 = arith.constant 0 : index
    %c0_59 = arith.constant 0 : index
    %110 = vector.load %arg4[%109, %c0_58, %c0_59] : memref<21x1x128xf32, #tpu.memory_space<vmem>>, vector<1x1x128xf32>
    %111 = vector.shape_cast %110 : vector<1x1x128xf32> to vector<1x128xf32>
    %c1_60 = arith.constant 1 : index
    %c1_61 = arith.constant 1 : index
    %c0_62 = arith.constant 0 : index
    %112 = vector.load %arg9[%c1_60, %c1_61, %c0_62] : memref<8x8x128xf32, #tpu.memory_space<vmem>>, vector<1x1x128xf32>
    %113 = vector.shape_cast %112 : vector<1x1x128xf32> to vector<1x128xf32>
    %114 = vector.shape_cast %111 : vector<1x128xf32> to vector<1x1x128xf32>
    tpu.vector_store %arg9[%c1_60, %c1_61, %c0_62], %114 {strides = array<i32>} : memref<8x8x128xf32, #tpu.memory_space<vmem>>, vector<1x1x128xf32>,
    %c8_i32_63 = arith.constant 8 : i32
    %115 = arith.muli %0, %c8_i32_63 : i32
    %c10_i32 = arith.constant 10 : i32
    %116 = arith.addi %115, %c10_i32 : i32
    %117 = arith.index_cast %116 : i32 to index
    %118 = memref.load %arg2[%117] : memref<64xi32, #tpu.memory_space<smem>>
    %119 = arith.index_cast %118 : i32 to index
    %c0_64 = arith.constant 0 : index
    %c0_65 = arith.constant 0 : index
    %120 = vector.load %arg4[%119, %c0_64, %c0_65] : memref<21x1x128xf32, #tpu.memory_space<vmem>>, vector<1x1x128xf32>
    %121 = vector.shape_cast %120 : vector<1x1x128xf32> to vector<1x128xf32>
    %c1_66 = arith.constant 1 : index
    %c2_67 = arith.constant 2 : index
    %c0_68 = arith.constant 0 : index
    %122 = vector.load %arg9[%c1_66, %c2_67, %c0_68] : memref<8x8x128xf32, #tpu.memory_space<vmem>>, vector<1x1x128xf32>
    %123 = vector.shape_cast %122 : vector<1x1x128xf32> to vector<1x128xf32>
    %124 = vector.shape_cast %121 : vector<1x128xf32> to vector<1x1x128xf32>
    tpu.vector_store %arg9[%c1_66, %c2_67, %c0_68], %124 {strides = array<i32>} : memref<8x8x128xf32, #tpu.memory_space<vmem>>, vector<1x1x128xf32>,
    %c8_i32_69 = arith.constant 8 : i32
    %125 = arith.muli %0, %c8_i32_69 : i32
    %c11_i32 = arith.constant 11 : i32
    %126 = arith.addi %125, %c11_i32 : i32
    %127 = arith.index_cast %126 : i32 to index
    %128 = memref.load %arg2[%127] : memref<64xi32, #tpu.memory_space<smem>>
    %129 = arith.index_cast %128 : i32 to index
    %c0_70 = arith.constant 0 : index
    %c0_71 = arith.constant 0 : index
    %130 = vector.load %arg4[%129, %c0_70, %c0_71] : memref<21x1x128xf32, #tpu.memory_space<vmem>>, vector<1x1x128xf32>
    %131 = vector.shape_cast %130 : vector<1x1x128xf32> to vector<1x128xf32>
    %c1_72 = arith.constant 1 : index
    %c3_73 = arith.constant 3 : index
    %c0_74 = arith.constant 0 : index
    %132 = vector.load %arg9[%c1_72, %c3_73, %c0_74] : memref<8x8x128xf32, #tpu.memory_space<vmem>>, vector<1x1x128xf32>
    %133 = vector.shape_cast %132 : vector<1x1x128xf32> to vector<1x128xf32>
    %134 = vector.shape_cast %131 : vector<1x128xf32> to vector<1x1x128xf32>
    tpu.vector_store %arg9[%c1_72, %c3_73, %c0_74], %134 {strides = array<i32>} : memref<8x8x128xf32, #tpu.memory_space<vmem>>, vector<1x1x128xf32>,
    %c8_i32_75 = arith.constant 8 : i32
    %135 = arith.muli %0, %c8_i32_75 : i32
    %c12_i32 = arith.constant 12 : i32
    %136 = arith.addi %135, %c12_i32 : i32
    %137 = arith.index_cast %136 : i32 to index
    %138 = memref.load %arg2[%137] : memref<64xi32, #tpu.memory_space<smem>>
    %139 = arith.index_cast %138 : i32 to index
    %c0_76 = arith.constant 0 : index
    %c0_77 = arith.constant 0 : index
    %140 = vector.load %arg4[%139, %c0_76, %c0_77] : memref<21x1x128xf32, #tpu.memory_space<vmem>>, vector<1x1x128xf32>
    %141 = vector.shape_cast %140 : vector<1x1x128xf32> to vector<1x128xf32>
    %c1_78 = arith.constant 1 : index
    %c4_79 = arith.constant 4 : index
    %c0_80 = arith.constant 0 : index
    %142 = vector.load %arg9[%c1_78, %c4_79, %c0_80] : memref<8x8x128xf32, #tpu.memory_space<vmem>>, vector<1x1x128xf32>
    %143 = vector.shape_cast %142 : vector<1x1x128xf32> to vector<1x128xf32>
    %144 = vector.shape_cast %141 : vector<1x128xf32> to vector<1x1x128xf32>
    tpu.vector_store %arg9[%c1_78, %c4_79, %c0_80], %144 {strides = array<i32>} : memref<8x8x128xf32, #tpu.memory_space<vmem>>, vector<1x1x128xf32>,
    %c8_i32_81 = arith.constant 8 : i32
    %145 = arith.muli %0, %c8_i32_81 : i32
    %c13_i32 = arith.constant 13 : i32
    %146 = arith.addi %145, %c13_i32 : i32
    %147 = arith.index_cast %146 : i32 to index
    %148 = memref.load %arg2[%147] : memref<64xi32, #tpu.memory_space<smem>>
    %149 = arith.index_cast %148 : i32 to index
    %c0_82 = arith.constant 0 : index
    %c0_83 = arith.constant 0 : index
    %150 = vector.load %arg4[%149, %c0_82, %c0_83] : memref<21x1x128xf32, #tpu.memory_space<vmem>>, vector<1x1x128xf32>
    %151 = vector.shape_cast %150 : vector<1x1x128xf32> to vector<1x128xf32>
    %c1_84 = arith.constant 1 : index
    %c5_85 = arith.constant 5 : index
    %c0_86 = arith.constant 0 : index
    %152 = vector.load %arg9[%c1_84, %c5_85, %c0_86] : memref<8x8x128xf32, #tpu.memory_space<vmem>>, vector<1x1x128xf32>
    %153 = vector.shape_cast %152 : vector<1x1x128xf32> to vector<1x128xf32>
    %154 = vector.shape_cast %151 : vector<1x128xf32> to vector<1x1x128xf32>
    tpu.vector_store %arg9[%c1_84, %c5_85, %c0_86], %154 {strides = array<i32>} : memref<8x8x128xf32, #tpu.memory_space<vmem>>, vector<1x1x128xf32>,
    %c8_i32_87 = arith.constant 8 : i32
    %155 = arith.muli %0, %c8_i32_87 : i32
    %c14_i32 = arith.constant 14 : i32
    %156 = arith.addi %155, %c14_i32 : i32
    %157 = arith.index_cast %156 : i32 to index
    %158 = memref.load %arg2[%157] : memref<64xi32, #tpu.memory_space<smem>>
    %159 = arith.index_cast %158 : i32 to index
    %c0_88 = arith.constant 0 : index
    %c0_89 = arith.constant 0 : index
    %160 = vector.load %arg4[%159, %c0_88, %c0_89] : memref<21x1x128xf32, #tpu.memory_space<vmem>>, vector<1x1x128xf32>
    %161 = vector.shape_cast %160 : vector<1x1x128xf32> to vector<1x128xf32>
    %c1_90 = arith.constant 1 : index
    %c6_91 = arith.constant 6 : index
    %c0_92 = arith.constant 0 : index
    %162 = vector.load %arg9[%c1_90, %c6_91, %c0_92] : memref<8x8x128xf32, #tpu.memory_space<vmem>>, vector<1x1x128xf32>
    %163 = vector.shape_cast %162 : vector<1x1x128xf32> to vector<1x128xf32>
    %164 = vector.shape_cast %161 : vector<1x128xf32> to vector<1x1x128xf32>
    tpu.vector_store %arg9[%c1_90, %c6_91, %c0_92], %164 {strides = array<i32>} : memref<8x8x128xf32, #tpu.memory_space<vmem>>, vector<1x1x128xf32>,
    %c8_i32_93 = arith.constant 8 : i32
    %165 = arith.muli %0, %c8_i32_93 : i32
    %c15_i32 = arith.constant 15 : i32
    %166 = arith.addi %165, %c15_i32 : i32
    %167 = arith.index_cast %166 : i32 to index
    %168 = memref.load %arg2[%167] : memref<64xi32, #tpu.memory_space<smem>>
    %169 = arith.index_cast %168 : i32 to index
    %c0_94 = arith.constant 0 : index
    %c0_95 = arith.constant 0 : index
    %170 = vector.load %arg4[%169, %c0_94, %c0_95] : memref<21x1x128xf32, #tpu.memory_space<vmem>>, vector<1x1x128xf32>
    %171 = vector.shape_cast %170 : vector<1x1x128xf32> to vector<1x128xf32>
    %c1_96 = arith.constant 1 : index
    %c7_97 = arith.constant 7 : index
    %c0_98 = arith.constant 0 : index
    %172 = vector.load %arg9[%c1_96, %c7_97, %c0_98] : memref<8x8x128xf32, #tpu.memory_space<vmem>>, vector<1x1x128xf32>
    %173 = vector.shape_cast %172 : vector<1x1x128xf32> to vector<1x128xf32>
    %174 = vector.shape_cast %171 : vector<1x128xf32> to vector<1x1x128xf32>
    tpu.vector_store %arg9[%c1_96, %c7_97, %c0_98], %174 {strides = array<i32>} : memref<8x8x128xf32, #tpu.memory_space<vmem>>, vector<1x1x128xf32>,
    %c2_i32_99 = arith.constant 2 : i32
    %175 = arith.addi %0, %c2_i32_99 : i32
    %176 = arith.index_cast %175 : i32 to index
    %177 = memref.load %arg1[%176] : memref<8xi32, #tpu.memory_space<smem>>
    %178 = arith.index_cast %177 : i32 to index
    %c0_100 = arith.constant 0 : index
    %c0_101 = arith.constant 0 : index
    %179 = vector.load %arg3[%178, %c0_100, %c0_101] : memref<11x1x128xf32, #tpu.memory_space<vmem>>, vector<1x1x128xf32>
    %180 = vector.shape_cast %179 : vector<1x1x128xf32> to vector<1x128xf32>
    %c2_102 = arith.constant 2 : index
    %c0_103 = arith.constant 0 : index
    %181 = vector.load %arg8[%c2_102, %c0_103] : memref<8x128xf32, #tpu.memory_space<vmem>>, vector<1x128xf32>
    tpu.vector_store %arg8[%c2_102, %c0_103], %180 {strides = array<i32>} : memref<8x128xf32, #tpu.memory_space<vmem>>, vector<1x128xf32>,
    %c8_i32_104 = arith.constant 8 : i32
    %182 = arith.muli %0, %c8_i32_104 : i32
    %c16_i32 = arith.constant 16 : i32
    %183 = arith.addi %182, %c16_i32 : i32
    %184 = arith.index_cast %183 : i32 to index
    %185 = memref.load %arg2[%184] : memref<64xi32, #tpu.memory_space<smem>>
    %186 = arith.index_cast %185 : i32 to index
    %c0_105 = arith.constant 0 : index
    %c0_106 = arith.constant 0 : index
    %187 = vector.load %arg4[%186, %c0_105, %c0_106] : memref<21x1x128xf32, #tpu.memory_space<vmem>>, vector<1x1x128xf32>
    %188 = vector.shape_cast %187 : vector<1x1x128xf32> to vector<1x128xf32>
    %c2_107 = arith.constant 2 : index
    %c0_108 = arith.constant 0 : index
    %c0_109 = arith.constant 0 : index
    %189 = vector.load %arg9[%c2_107, %c0_108, %c0_109] : memref<8x8x128xf32, #tpu.memory_space<vmem>>, vector<1x1x128xf32>
    %190 = vector.shape_cast %189 : vector<1x1x128xf32> to vector<1x128xf32>
    %191 = vector.shape_cast %188 : vector<1x128xf32> to vector<1x1x128xf32>
    tpu.vector_store %arg9[%c2_107, %c0_108, %c0_109], %191 {strides = array<i32>} : memref<8x8x128xf32, #tpu.memory_space<vmem>>, vector<1x1x128xf32>,
    %c8_i32_110 = arith.constant 8 : i32
    %192 = arith.muli %0, %c8_i32_110 : i32
    %c17_i32 = arith.constant 17 : i32
    %193 = arith.addi %192, %c17_i32 : i32
    %194 = arith.index_cast %193 : i32 to index
    %195 = memref.load %arg2[%194] : memref<64xi32, #tpu.memory_space<smem>>
    %196 = arith.index_cast %195 : i32 to index
    %c0_111 = arith.constant 0 : index
    %c0_112 = arith.constant 0 : index
    %197 = vector.load %arg4[%196, %c0_111, %c0_112] : memref<21x1x128xf32, #tpu.memory_space<vmem>>, vector<1x1x128xf32>
    %198 = vector.shape_cast %197 : vector<1x1x128xf32> to vector<1x128xf32>
    %c2_113 = arith.constant 2 : index
    %c1_114 = arith.constant 1 : index
    %c0_115 = arith.constant 0 : index
    %199 = vector.load %arg9[%c2_113, %c1_114, %c0_115] : memref<8x8x128xf32, #tpu.memory_space<vmem>>, vector<1x1x128xf32>
    %200 = vector.shape_cast %199 : vector<1x1x128xf32> to vector<1x128xf32>
    %201 = vector.shape_cast %198 : vector<1x128xf32> to vector<1x1x128xf32>
    tpu.vector_store %arg9[%c2_113, %c1_114, %c0_115], %201 {strides = array<i32>} : memref<8x8x128xf32, #tpu.memory_space<vmem>>, vector<1x1x128xf32>,
    %c8_i32_116 = arith.constant 8 : i32
    %202 = arith.muli %0, %c8_i32_116 : i32
    %c18_i32 = arith.constant 18 : i32
    %203 = arith.addi %202, %c18_i32 : i32
    %204 = arith.index_cast %203 : i32 to index
    %205 = memref.load %arg2[%204] : memref<64xi32, #tpu.memory_space<smem>>
    %206 = arith.index_cast %205 : i32 to index
    %c0_117 = arith.constant 0 : index
    %c0_118 = arith.constant 0 : index
    %207 = vector.load %arg4[%206, %c0_117, %c0_118] : memref<21x1x128xf32, #tpu.memory_space<vmem>>, vector<1x1x128xf32>
    %208 = vector.shape_cast %207 : vector<1x1x128xf32> to vector<1x128xf32>
    %c2_119 = arith.constant 2 : index
    %c2_120 = arith.constant 2 : index
    %c0_121 = arith.constant 0 : index
    %209 = vector.load %arg9[%c2_119, %c2_120, %c0_121] : memref<8x8x128xf32, #tpu.memory_space<vmem>>, vector<1x1x128xf32>
    %210 = vector.shape_cast %209 : vector<1x1x128xf32> to vector<1x128xf32>
    %211 = vector.shape_cast %208 : vector<1x128xf32> to vector<1x1x128xf32>
    tpu.vector_store %arg9[%c2_119, %c2_120, %c0_121], %211 {strides = array<i32>} : memref<8x8x128xf32, #tpu.memory_space<vmem>>, vector<1x1x128xf32>,
    %c8_i32_122 = arith.constant 8 : i32
    %212 = arith.muli %0, %c8_i32_122 : i32
    %c19_i32 = arith.constant 19 : i32
    %213 = arith.addi %212, %c19_i32 : i32
    %214 = arith.index_cast %213 : i32 to index
    %215 = memref.load %arg2[%214] : memref<64xi32, #tpu.memory_space<smem>>
    %216 = arith.index_cast %215 : i32 to index
    %c0_123 = arith.constant 0 : index
    %c0_124 = arith.constant 0 : index
    %217 = vector.load %arg4[%216, %c0_123, %c0_124] : memref<21x1x128xf32, #tpu.memory_space<vmem>>, vector<1x1x128xf32>
    %218 = vector.shape_cast %217 : vector<1x1x128xf32> to vector<1x128xf32>
    %c2_125 = arith.constant 2 : index
    %c3_126 = arith.constant 3 : index
    %c0_127 = arith.constant 0 : index
    %219 = vector.load %arg9[%c2_125, %c3_126, %c0_127] : memref<8x8x128xf32, #tpu.memory_space<vmem>>, vector<1x1x128xf32>
    %220 = vector.shape_cast %219 : vector<1x1x128xf32> to vector<1x128xf32>
    %221 = vector.shape_cast %218 : vector<1x128xf32> to vector<1x1x128xf32>
    tpu.vector_store %arg9[%c2_125, %c3_126, %c0_127], %221 {strides = array<i32>} : memref<8x8x128xf32, #tpu.memory_space<vmem>>, vector<1x1x128xf32>,
    %c8_i32_128 = arith.constant 8 : i32
    %222 = arith.muli %0, %c8_i32_128 : i32
    %c20_i32 = arith.constant 20 : i32
    %223 = arith.addi %222, %c20_i32 : i32
    %224 = arith.index_cast %223 : i32 to index
    %225 = memref.load %arg2[%224] : memref<64xi32, #tpu.memory_space<smem>>
    %226 = arith.index_cast %225 : i32 to index
    %c0_129 = arith.constant 0 : index
    %c0_130 = arith.constant 0 : index
    %227 = vector.load %arg4[%226, %c0_129, %c0_130] : memref<21x1x128xf32, #tpu.memory_space<vmem>>, vector<1x1x128xf32>
    %228 = vector.shape_cast %227 : vector<1x1x128xf32> to vector<1x128xf32>
    %c2_131 = arith.constant 2 : index
    %c4_132 = arith.constant 4 : index
    %c0_133 = arith.constant 0 : index
    %229 = vector.load %arg9[%c2_131, %c4_132, %c0_133] : memref<8x8x128xf32, #tpu.memory_space<vmem>>, vector<1x1x128xf32>
    %230 = vector.shape_cast %229 : vector<1x1x128xf32> to vector<1x128xf32>
    %231 = vector.shape_cast %228 : vector<1x128xf32> to vector<1x1x128xf32>
    tpu.vector_store %arg9[%c2_131, %c4_132, %c0_133], %231 {strides = array<i32>} : memref<8x8x128xf32, #tpu.memory_space<vmem>>, vector<1x1x128xf32>,
    %c8_i32_134 = arith.constant 8 : i32
    %232 = arith.muli %0, %c8_i32_134 : i32
    %c21_i32 = arith.constant 21 : i32
    %233 = arith.addi %232, %c21_i32 : i32
    %234 = arith.index_cast %233 : i32 to index
    %235 = memref.load %arg2[%234] : memref<64xi32, #tpu.memory_space<smem>>
    %236 = arith.index_cast %235 : i32 to index
    %c0_135 = arith.constant 0 : index
    %c0_136 = arith.constant 0 : index
    %237 = vector.load %arg4[%236, %c0_135, %c0_136] : memref<21x1x128xf32, #tpu.memory_space<vmem>>, vector<1x1x128xf32>
    %238 = vector.shape_cast %237 : vector<1x1x128xf32> to vector<1x128xf32>
    %c2_137 = arith.constant 2 : index
    %c5_138 = arith.constant 5 : index
    %c0_139 = arith.constant 0 : index
    %239 = vector.load %arg9[%c2_137, %c5_138, %c0_139] : memref<8x8x128xf32, #tpu.memory_space<vmem>>, vector<1x1x128xf32>
    %240 = vector.shape_cast %239 : vector<1x1x128xf32> to vector<1x128xf32>
    %241 = vector.shape_cast %238 : vector<1x128xf32> to vector<1x1x128xf32>
    tpu.vector_store %arg9[%c2_137, %c5_138, %c0_139], %241 {strides = array<i32>} : memref<8x8x128xf32, #tpu.memory_space<vmem>>, vector<1x1x128xf32>,
    %c8_i32_140 = arith.constant 8 : i32
    %242 = arith.muli %0, %c8_i32_140 : i32
    %c22_i32 = arith.constant 22 : i32
    %243 = arith.addi %242, %c22_i32 : i32
    %244 = arith.index_cast %243 : i32 to index
    %245 = memref.load %arg2[%244] : memref<64xi32, #tpu.memory_space<smem>>
    %246 = arith.index_cast %245 : i32 to index
    %c0_141 = arith.constant 0 : index
    %c0_142 = arith.constant 0 : index
    %247 = vector.load %arg4[%246, %c0_141, %c0_142] : memref<21x1x128xf32, #tpu.memory_space<vmem>>, vector<1x1x128xf32>
    %248 = vector.shape_cast %247 : vector<1x1x128xf32> to vector<1x128xf32>
    %c2_143 = arith.constant 2 : index
    %c6_144 = arith.constant 6 : index
    %c0_145 = arith.constant 0 : index
    %249 = vector.load %arg9[%c2_143, %c6_144, %c0_145] : memref<8x8x128xf32, #tpu.memory_space<vmem>>, vector<1x1x128xf32>
    %250 = vector.shape_cast %249 : vector<1x1x128xf32> to vector<1x128xf32>
    %251 = vector.shape_cast %248 : vector<1x128xf32> to vector<1x1x128xf32>
    tpu.vector_store %arg9[%c2_143, %c6_144, %c0_145], %251 {strides = array<i32>} : memref<8x8x128xf32, #tpu.memory_space<vmem>>, vector<1x1x128xf32>,
    %c8_i32_146 = arith.constant 8 : i32
    %252 = arith.muli %0, %c8_i32_146 : i32
    %c23_i32 = arith.constant 23 : i32
    %253 = arith.addi %252, %c23_i32 : i32
    %254 = arith.index_cast %253 : i32 to index
    %255 = memref.load %arg2[%254] : memref<64xi32, #tpu.memory_space<smem>>
    %256 = arith.index_cast %255 : i32 to index
    %c0_147 = arith.constant 0 : index
    %c0_148 = arith.constant 0 : index
    %257 = vector.load %arg4[%256, %c0_147, %c0_148] : memref<21x1x128xf32, #tpu.memory_space<vmem>>, vector<1x1x128xf32>
    %258 = vector.shape_cast %257 : vector<1x1x128xf32> to vector<1x128xf32>
    %c2_149 = arith.constant 2 : index
    %c7_150 = arith.constant 7 : index
    %c0_151 = arith.constant 0 : index
    %259 = vector.load %arg9[%c2_149, %c7_150, %c0_151] : memref<8x8x128xf32, #tpu.memory_space<vmem>>, vector<1x1x128xf32>
    %260 = vector.shape_cast %259 : vector<1x1x128xf32> to vector<1x128xf32>
    %261 = vector.shape_cast %258 : vector<1x128xf32> to vector<1x1x128xf32>
    tpu.vector_store %arg9[%c2_149, %c7_150, %c0_151], %261 {strides = array<i32>} : memref<8x8x128xf32, #tpu.memory_space<vmem>>, vector<1x1x128xf32>,
    %c3_i32_152 = arith.constant 3 : i32
    %262 = arith.addi %0, %c3_i32_152 : i32
    %263 = arith.index_cast %262 : i32 to index
    %264 = memref.load %arg1[%263] : memref<8xi32, #tpu.memory_space<smem>>
    %265 = arith.index_cast %264 : i32 to index
    %c0_153 = arith.constant 0 : index
    %c0_154 = arith.constant 0 : index
    %266 = vector.load %arg3[%265, %c0_153, %c0_154] : memref<11x1x128xf32, #tpu.memory_space<vmem>>, vector<1x1x128xf32>
    %267 = vector.shape_cast %266 : vector<1x1x128xf32> to vector<1x128xf32>
    %c3_155 = arith.constant 3 : index
    %c0_156 = arith.constant 0 : index
    %268 = vector.load %arg8[%c3_155, %c0_156] : memref<8x128xf32, #tpu.memory_space<vmem>>, vector<1x128xf32>
    tpu.vector_store %arg8[%c3_155, %c0_156], %267 {strides = array<i32>} : memref<8x128xf32, #tpu.memory_space<vmem>>, vector<1x128xf32>,
    %c8_i32_157 = arith.constant 8 : i32
    %269 = arith.muli %0, %c8_i32_157 : i32
    %c24_i32 = arith.constant 24 : i32
    %270 = arith.addi %269, %c24_i32 : i32
    %271 = arith.index_cast %270 : i32 to index
    %272 = memref.load %arg2[%271] : memref<64xi32, #tpu.memory_space<smem>>
    %273 = arith.index_cast %272 : i32 to index
    %c0_158 = arith.constant 0 : index
    %c0_159 = arith.constant 0 : index
    %274 = vector.load %arg4[%273, %c0_158, %c0_159] : memref<21x1x128xf32, #tpu.memory_space<vmem>>, vector<1x1x128xf32>
    %275 = vector.shape_cast %274 : vector<1x1x128xf32> to vector<1x128xf32>
    %c3_160 = arith.constant 3 : index
    %c0_161 = arith.constant 0 : index
    %c0_162 = arith.constant 0 : index
    %276 = vector.load %arg9[%c3_160, %c0_161, %c0_162] : memref<8x8x128xf32, #tpu.memory_space<vmem>>, vector<1x1x128xf32>
    %277 = vector.shape_cast %276 : vector<1x1x128xf32> to vector<1x128xf32>
    %278 = vector.shape_cast %275 : vector<1x128xf32> to vector<1x1x128xf32>
    tpu.vector_store %arg9[%c3_160, %c0_161, %c0_162], %278 {strides = array<i32>} : memref<8x8x128xf32, #tpu.memory_space<vmem>>, vector<1x1x128xf32>,
    %c8_i32_163 = arith.constant 8 : i32
    %279 = arith.muli %0, %c8_i32_163 : i32
    %c25_i32 = arith.constant 25 : i32
    %280 = arith.addi %279, %c25_i32 : i32
    %281 = arith.index_cast %280 : i32 to index
    %282 = memref.load %arg2[%281] : memref<64xi32, #tpu.memory_space<smem>>
    %283 = arith.index_cast %282 : i32 to index
    %c0_164 = arith.constant 0 : index
    %c0_165 = arith.constant 0 : index
    %284 = vector.load %arg4[%283, %c0_164, %c0_165] : memref<21x1x128xf32, #tpu.memory_space<vmem>>, vector<1x1x128xf32>
    %285 = vector.shape_cast %284 : vector<1x1x128xf32> to vector<1x128xf32>
    %c3_166 = arith.constant 3 : index
    %c1_167 = arith.constant 1 : index
    %c0_168 = arith.constant 0 : index
    %286 = vector.load %arg9[%c3_166, %c1_167, %c0_168] : memref<8x8x128xf32, #tpu.memory_space<vmem>>, vector<1x1x128xf32>
    %287 = vector.shape_cast %286 : vector<1x1x128xf32> to vector<1x128xf32>
    %288 = vector.shape_cast %285 : vector<1x128xf32> to vector<1x1x128xf32>
    tpu.vector_store %arg9[%c3_166, %c1_167, %c0_168], %288 {strides = array<i32>} : memref<8x8x128xf32, #tpu.memory_space<vmem>>, vector<1x1x128xf32>,
    %c8_i32_169 = arith.constant 8 : i32
    %289 = arith.muli %0, %c8_i32_169 : i32
    %c26_i32 = arith.constant 26 : i32
    %290 = arith.addi %289, %c26_i32 : i32
    %291 = arith.index_cast %290 : i32 to index
    %292 = memref.load %arg2[%291] : memref<64xi32, #tpu.memory_space<smem>>
    %293 = arith.index_cast %292 : i32 to index
    %c0_170 = arith.constant 0 : index
    %c0_171 = arith.constant 0 : index
    %294 = vector.load %arg4[%293, %c0_170, %c0_171] : memref<21x1x128xf32, #tpu.memory_space<vmem>>, vector<1x1x128xf32>
    %295 = vector.shape_cast %294 : vector<1x1x128xf32> to vector<1x128xf32>
    %c3_172 = arith.constant 3 : index
    %c2_173 = arith.constant 2 : index
    %c0_174 = arith.constant 0 : index
    %296 = vector.load %arg9[%c3_172, %c2_173, %c0_174] : memref<8x8x128xf32, #tpu.memory_space<vmem>>, vector<1x1x128xf32>
    %297 = vector.shape_cast %296 : vector<1x1x128xf32> to vector<1x128xf32>
    %298 = vector.shape_cast %295 : vector<1x128xf32> to vector<1x1x128xf32>
    tpu.vector_store %arg9[%c3_172, %c2_173, %c0_174], %298 {strides = array<i32>} : memref<8x8x128xf32, #tpu.memory_space<vmem>>, vector<1x1x128xf32>,
    %c8_i32_175 = arith.constant 8 : i32
    %299 = arith.muli %0, %c8_i32_175 : i32
    %c27_i32 = arith.constant 27 : i32
    %300 = arith.addi %299, %c27_i32 : i32
    %301 = arith.index_cast %300 : i32 to index
    %302 = memref.load %arg2[%301] : memref<64xi32, #tpu.memory_space<smem>>
    %303 = arith.index_cast %302 : i32 to index
    %c0_176 = arith.constant 0 : index
    %c0_177 = arith.constant 0 : index
    %304 = vector.load %arg4[%303, %c0_176, %c0_177] : memref<21x1x128xf32, #tpu.memory_space<vmem>>, vector<1x1x128xf32>
    %305 = vector.shape_cast %304 : vector<1x1x128xf32> to vector<1x128xf32>
    %c3_178 = arith.constant 3 : index
    %c3_179 = arith.constant 3 : index
    %c0_180 = arith.constant 0 : index
    %306 = vector.load %arg9[%c3_178, %c3_179, %c0_180] : memref<8x8x128xf32, #tpu.memory_space<vmem>>, vector<1x1x128xf32>
    %307 = vector.shape_cast %306 : vector<1x1x128xf32> to vector<1x128xf32>
    %308 = vector.shape_cast %305 : vector<1x128xf32> to vector<1x1x128xf32>
    tpu.vector_store %arg9[%c3_178, %c3_179, %c0_180], %308 {strides = array<i32>} : memref<8x8x128xf32, #tpu.memory_space<vmem>>, vector<1x1x128xf32>,
    %c8_i32_181 = arith.constant 8 : i32
    %309 = arith.muli %0, %c8_i32_181 : i32
    %c28_i32 = arith.constant 28 : i32
    %310 = arith.addi %309, %c28_i32 : i32
    %311 = arith.index_cast %310 : i32 to index
    %312 = memref.load %arg2[%311] : memref<64xi32, #tpu.memory_space<smem>>
    %313 = arith.index_cast %312 : i32 to index
    %c0_182 = arith.constant 0 : index
    %c0_183 = arith.constant 0 : index
    %314 = vector.load %arg4[%313, %c0_182, %c0_183] : memref<21x1x128xf32, #tpu.memory_space<vmem>>, vector<1x1x128xf32>
    %315 = vector.shape_cast %314 : vector<1x1x128xf32> to vector<1x128xf32>
    %c3_184 = arith.constant 3 : index
    %c4_185 = arith.constant 4 : index
    %c0_186 = arith.constant 0 : index
    %316 = vector.load %arg9[%c3_184, %c4_185, %c0_186] : memref<8x8x128xf32, #tpu.memory_space<vmem>>, vector<1x1x128xf32>
    %317 = vector.shape_cast %316 : vector<1x1x128xf32> to vector<1x128xf32>
    %318 = vector.shape_cast %315 : vector<1x128xf32> to vector<1x1x128xf32>
    tpu.vector_store %arg9[%c3_184, %c4_185, %c0_186], %318 {strides = array<i32>} : memref<8x8x128xf32, #tpu.memory_space<vmem>>, vector<1x1x128xf32>,
    %c8_i32_187 = arith.constant 8 : i32
    %319 = arith.muli %0, %c8_i32_187 : i32
    %c29_i32 = arith.constant 29 : i32
    %320 = arith.addi %319, %c29_i32 : i32
    %321 = arith.index_cast %320 : i32 to index
    %322 = memref.load %arg2[%321] : memref<64xi32, #tpu.memory_space<smem>>
    %323 = arith.index_cast %322 : i32 to index
    %c0_188 = arith.constant 0 : index
    %c0_189 = arith.constant 0 : index
    %324 = vector.load %arg4[%323, %c0_188, %c0_189] : memref<21x1x128xf32, #tpu.memory_space<vmem>>, vector<1x1x128xf32>
    %325 = vector.shape_cast %324 : vector<1x1x128xf32> to vector<1x128xf32>
    %c3_190 = arith.constant 3 : index
    %c5_191 = arith.constant 5 : index
    %c0_192 = arith.constant 0 : index
    %326 = vector.load %arg9[%c3_190, %c5_191, %c0_192] : memref<8x8x128xf32, #tpu.memory_space<vmem>>, vector<1x1x128xf32>
    %327 = vector.shape_cast %326 : vector<1x1x128xf32> to vector<1x128xf32>
    %328 = vector.shape_cast %325 : vector<1x128xf32> to vector<1x1x128xf32>
    tpu.vector_store %arg9[%c3_190, %c5_191, %c0_192], %328 {strides = array<i32>} : memref<8x8x128xf32, #tpu.memory_space<vmem>>, vector<1x1x128xf32>,
    %c8_i32_193 = arith.constant 8 : i32
    %329 = arith.muli %0, %c8_i32_193 : i32
    %c30_i32 = arith.constant 30 : i32
    %330 = arith.addi %329, %c30_i32 : i32
    %331 = arith.index_cast %330 : i32 to index
    %332 = memref.load %arg2[%331] : memref<64xi32, #tpu.memory_space<smem>>
    %333 = arith.index_cast %332 : i32 to index
    %c0_194 = arith.constant 0 : index
    %c0_195 = arith.constant 0 : index
    %334 = vector.load %arg4[%333, %c0_194, %c0_195] : memref<21x1x128xf32, #tpu.memory_space<vmem>>, vector<1x1x128xf32>
    %335 = vector.shape_cast %334 : vector<1x1x128xf32> to vector<1x128xf32>
    %c3_196 = arith.constant 3 : index
    %c6_197 = arith.constant 6 : index
    %c0_198 = arith.constant 0 : index
    %336 = vector.load %arg9[%c3_196, %c6_197, %c0_198] : memref<8x8x128xf32, #tpu.memory_space<vmem>>, vector<1x1x128xf32>
    %337 = vector.shape_cast %336 : vector<1x1x128xf32> to vector<1x128xf32>
    %338 = vector.shape_cast %335 : vector<1x128xf32> to vector<1x1x128xf32>
    tpu.vector_store %arg9[%c3_196, %c6_197, %c0_198], %338 {strides = array<i32>} : memref<8x8x128xf32, #tpu.memory_space<vmem>>, vector<1x1x128xf32>,
    %c8_i32_199 = arith.constant 8 : i32
    %339 = arith.muli %0, %c8_i32_199 : i32
    %c31_i32 = arith.constant 31 : i32
    %340 = arith.addi %339, %c31_i32 : i32
    %341 = arith.index_cast %340 : i32 to index
    %342 = memref.load %arg2[%341] : memref<64xi32, #tpu.memory_space<smem>>
    %343 = arith.index_cast %342 : i32 to index
    %c0_200 = arith.constant 0 : index
    %c0_201 = arith.constant 0 : index
    %344 = vector.load %arg4[%343, %c0_200, %c0_201] : memref<21x1x128xf32, #tpu.memory_space<vmem>>, vector<1x1x128xf32>
    %345 = vector.shape_cast %344 : vector<1x1x128xf32> to vector<1x128xf32>
    %c3_202 = arith.constant 3 : index
    %c7_203 = arith.constant 7 : index
    %c0_204 = arith.constant 0 : index
    %346 = vector.load %arg9[%c3_202, %c7_203, %c0_204] : memref<8x8x128xf32, #tpu.memory_space<vmem>>, vector<1x1x128xf32>
    %347 = vector.shape_cast %346 : vector<1x1x128xf32> to vector<1x128xf32>
    %348 = vector.shape_cast %345 : vector<1x128xf32> to vector<1x1x128xf32>
    tpu.vector_store %arg9[%c3_202, %c7_203, %c0_204], %348 {strides = array<i32>} : memref<8x8x128xf32, #tpu.memory_space<vmem>>, vector<1x1x128xf32>,
    %c4_i32_205 = arith.constant 4 : i32
    %349 = arith.addi %0, %c4_i32_205 : i32
    %350 = arith.index_cast %349 : i32 to index
    %351 = memref.load %arg1[%350] : memref<8xi32, #tpu.memory_space<smem>>
    %352 = arith.index_cast %351 : i32 to index
    %c0_206 = arith.constant 0 : index
    %c0_207 = arith.constant 0 : index
    %353 = vector.load %arg3[%352, %c0_206, %c0_207] : memref<11x1x128xf32, #tpu.memory_space<vmem>>, vector<1x1x128xf32>
    %354 = vector.shape_cast %353 : vector<1x1x128xf32> to vector<1x128xf32>
    %c4_208 = arith.constant 4 : index
    %c0_209 = arith.constant 0 : index
    %355 = vector.load %arg8[%c4_208, %c0_209] : memref<8x128xf32, #tpu.memory_space<vmem>>, vector<1x128xf32>
    tpu.vector_store %arg8[%c4_208, %c0_209], %354 {strides = array<i32>} : memref<8x128xf32, #tpu.memory_space<vmem>>, vector<1x128xf32>,
    %c8_i32_210 = arith.constant 8 : i32
    %356 = arith.muli %0, %c8_i32_210 : i32
    %c32_i32 = arith.constant 32 : i32
    %357 = arith.addi %356, %c32_i32 : i32
    %358 = arith.index_cast %357 : i32 to index
    %359 = memref.load %arg2[%358] : memref<64xi32, #tpu.memory_space<smem>>
    %360 = arith.index_cast %359 : i32 to index
    %c0_211 = arith.constant 0 : index
    %c0_212 = arith.constant 0 : index
    %361 = vector.load %arg4[%360, %c0_211, %c0_212] : memref<21x1x128xf32, #tpu.memory_space<vmem>>, vector<1x1x128xf32>
    %362 = vector.shape_cast %361 : vector<1x1x128xf32> to vector<1x128xf32>
    %c4_213 = arith.constant 4 : index
    %c0_214 = arith.constant 0 : index
    %c0_215 = arith.constant 0 : index
    %363 = vector.load %arg9[%c4_213, %c0_214, %c0_215] : memref<8x8x128xf32, #tpu.memory_space<vmem>>, vector<1x1x128xf32>
    %364 = vector.shape_cast %363 : vector<1x1x128xf32> to vector<1x128xf32>
    %365 = vector.shape_cast %362 : vector<1x128xf32> to vector<1x1x128xf32>
    tpu.vector_store %arg9[%c4_213, %c0_214, %c0_215], %365 {strides = array<i32>} : memref<8x8x128xf32, #tpu.memory_space<vmem>>, vector<1x1x128xf32>,
    %c8_i32_216 = arith.constant 8 : i32
    %366 = arith.muli %0, %c8_i32_216 : i32
    %c33_i32 = arith.constant 33 : i32
    %367 = arith.addi %366, %c33_i32 : i32
    %368 = arith.index_cast %367 : i32 to index
    %369 = memref.load %arg2[%368] : memref<64xi32, #tpu.memory_space<smem>>
    %370 = arith.index_cast %369 : i32 to index
    %c0_217 = arith.constant 0 : index
    %c0_218 = arith.constant 0 : index
    %371 = vector.load %arg4[%370, %c0_217, %c0_218] : memref<21x1x128xf32, #tpu.memory_space<vmem>>, vector<1x1x128xf32>
    %372 = vector.shape_cast %371 : vector<1x1x128xf32> to vector<1x128xf32>
    %c4_219 = arith.constant 4 : index
    %c1_220 = arith.constant 1 : index
    %c0_221 = arith.constant 0 : index
    %373 = vector.load %arg9[%c4_219, %c1_220, %c0_221] : memref<8x8x128xf32, #tpu.memory_space<vmem>>, vector<1x1x128xf32>
    %374 = vector.shape_cast %373 : vector<1x1x128xf32> to vector<1x128xf32>
    %375 = vector.shape_cast %372 : vector<1x128xf32> to vector<1x1x128xf32>
    tpu.vector_store %arg9[%c4_219, %c1_220, %c0_221], %375 {strides = array<i32>} : memref<8x8x128xf32, #tpu.memory_space<vmem>>, vector<1x1x128xf32>,
    %c8_i32_222 = arith.constant 8 : i32
    %376 = arith.muli %0, %c8_i32_222 : i32
    %c34_i32 = arith.constant 34 : i32
    %377 = arith.addi %376, %c34_i32 : i32
    %378 = arith.index_cast %377 : i32 to index
    %379 = memref.load %arg2[%378] : memref<64xi32, #tpu.memory_space<smem>>
    %380 = arith.index_cast %379 : i32 to index
    %c0_223 = arith.constant 0 : index
    %c0_224 = arith.constant 0 : index
    %381 = vector.load %arg4[%380, %c0_223, %c0_224] : memref<21x1x128xf32, #tpu.memory_space<vmem>>, vector<1x1x128xf32>
    %382 = vector.shape_cast %381 : vector<1x1x128xf32> to vector<1x128xf32>
    %c4_225 = arith.constant 4 : index
    %c2_226 = arith.constant 2 : index
    %c0_227 = arith.constant 0 : index
    %383 = vector.load %arg9[%c4_225, %c2_226, %c0_227] : memref<8x8x128xf32, #tpu.memory_space<vmem>>, vector<1x1x128xf32>
    %384 = vector.shape_cast %383 : vector<1x1x128xf32> to vector<1x128xf32>
    %385 = vector.shape_cast %382 : vector<1x128xf32> to vector<1x1x128xf32>
    tpu.vector_store %arg9[%c4_225, %c2_226, %c0_227], %385 {strides = array<i32>} : memref<8x8x128xf32, #tpu.memory_space<vmem>>, vector<1x1x128xf32>,
    %c8_i32_228 = arith.constant 8 : i32
    %386 = arith.muli %0, %c8_i32_228 : i32
    %c35_i32 = arith.constant 35 : i32
    %387 = arith.addi %386, %c35_i32 : i32
    %388 = arith.index_cast %387 : i32 to index
    %389 = memref.load %arg2[%388] : memref<64xi32, #tpu.memory_space<smem>>
    %390 = arith.index_cast %389 : i32 to index
    %c0_229 = arith.constant 0 : index
    %c0_230 = arith.constant 0 : index
    %391 = vector.load %arg4[%390, %c0_229, %c0_230] : memref<21x1x128xf32, #tpu.memory_space<vmem>>, vector<1x1x128xf32>
    %392 = vector.shape_cast %391 : vector<1x1x128xf32> to vector<1x128xf32>
    %c4_231 = arith.constant 4 : index
    %c3_232 = arith.constant 3 : index
    %c0_233 = arith.constant 0 : index
    %393 = vector.load %arg9[%c4_231, %c3_232, %c0_233] : memref<8x8x128xf32, #tpu.memory_space<vmem>>, vector<1x1x128xf32>
    %394 = vector.shape_cast %393 : vector<1x1x128xf32> to vector<1x128xf32>
    %395 = vector.shape_cast %392 : vector<1x128xf32> to vector<1x1x128xf32>
    tpu.vector_store %arg9[%c4_231, %c3_232, %c0_233], %395 {strides = array<i32>} : memref<8x8x128xf32, #tpu.memory_space<vmem>>, vector<1x1x128xf32>,
    %c8_i32_234 = arith.constant 8 : i32
    %396 = arith.muli %0, %c8_i32_234 : i32
    %c36_i32 = arith.constant 36 : i32
    %397 = arith.addi %396, %c36_i32 : i32
    %398 = arith.index_cast %397 : i32 to index
    %399 = memref.load %arg2[%398] : memref<64xi32, #tpu.memory_space<smem>>
    %400 = arith.index_cast %399 : i32 to index
    %c0_235 = arith.constant 0 : index
    %c0_236 = arith.constant 0 : index
    %401 = vector.load %arg4[%400, %c0_235, %c0_236] : memref<21x1x128xf32, #tpu.memory_space<vmem>>, vector<1x1x128xf32>
    %402 = vector.shape_cast %401 : vector<1x1x128xf32> to vector<1x128xf32>
    %c4_237 = arith.constant 4 : index
    %c4_238 = arith.constant 4 : index
    %c0_239 = arith.constant 0 : index
    %403 = vector.load %arg9[%c4_237, %c4_238, %c0_239] : memref<8x8x128xf32, #tpu.memory_space<vmem>>, vector<1x1x128xf32>
    %404 = vector.shape_cast %403 : vector<1x1x128xf32> to vector<1x128xf32>
    %405 = vector.shape_cast %402 : vector<1x128xf32> to vector<1x1x128xf32>
    tpu.vector_store %arg9[%c4_237, %c4_238, %c0_239], %405 {strides = array<i32>} : memref<8x8x128xf32, #tpu.memory_space<vmem>>, vector<1x1x128xf32>,
    %c8_i32_240 = arith.constant 8 : i32
    %406 = arith.muli %0, %c8_i32_240 : i32
    %c37_i32 = arith.constant 37 : i32
    %407 = arith.addi %406, %c37_i32 : i32
    %408 = arith.index_cast %407 : i32 to index
    %409 = memref.load %arg2[%408] : memref<64xi32, #tpu.memory_space<smem>>
    %410 = arith.index_cast %409 : i32 to index
    %c0_241 = arith.constant 0 : index
    %c0_242 = arith.constant 0 : index
    %411 = vector.load %arg4[%410, %c0_241, %c0_242] : memref<21x1x128xf32, #tpu.memory_space<vmem>>, vector<1x1x128xf32>
    %412 = vector.shape_cast %411 : vector<1x1x128xf32> to vector<1x128xf32>
    %c4_243 = arith.constant 4 : index
    %c5_244 = arith.constant 5 : index
    %c0_245 = arith.constant 0 : index
    %413 = vector.load %arg9[%c4_243, %c5_244, %c0_245] : memref<8x8x128xf32, #tpu.memory_space<vmem>>, vector<1x1x128xf32>
    %414 = vector.shape_cast %413 : vector<1x1x128xf32> to vector<1x128xf32>
    %415 = vector.shape_cast %412 : vector<1x128xf32> to vector<1x1x128xf32>
    tpu.vector_store %arg9[%c4_243, %c5_244, %c0_245], %415 {strides = array<i32>} : memref<8x8x128xf32, #tpu.memory_space<vmem>>, vector<1x1x128xf32>,
    %c8_i32_246 = arith.constant 8 : i32
    %416 = arith.muli %0, %c8_i32_246 : i32
    %c38_i32 = arith.constant 38 : i32
    %417 = arith.addi %416, %c38_i32 : i32
    %418 = arith.index_cast %417 : i32 to index
    %419 = memref.load %arg2[%418] : memref<64xi32, #tpu.memory_space<smem>>
    %420 = arith.index_cast %419 : i32 to index
    %c0_247 = arith.constant 0 : index
    %c0_248 = arith.constant 0 : index
    %421 = vector.load %arg4[%420, %c0_247, %c0_248] : memref<21x1x128xf32, #tpu.memory_space<vmem>>, vector<1x1x128xf32>
    %422 = vector.shape_cast %421 : vector<1x1x128xf32> to vector<1x128xf32>
    %c4_249 = arith.constant 4 : index
    %c6_250 = arith.constant 6 : index
    %c0_251 = arith.constant 0 : index
    %423 = vector.load %arg9[%c4_249, %c6_250, %c0_251] : memref<8x8x128xf32, #tpu.memory_space<vmem>>, vector<1x1x128xf32>
    %424 = vector.shape_cast %423 : vector<1x1x128xf32> to vector<1x128xf32>
    %425 = vector.shape_cast %422 : vector<1x128xf32> to vector<1x1x128xf32>
    tpu.vector_store %arg9[%c4_249, %c6_250, %c0_251], %425 {strides = array<i32>} : memref<8x8x128xf32, #tpu.memory_space<vmem>>, vector<1x1x128xf32>,
    %c8_i32_252 = arith.constant 8 : i32
    %426 = arith.muli %0, %c8_i32_252 : i32
    %c39_i32 = arith.constant 39 : i32
    %427 = arith.addi %426, %c39_i32 : i32
    %428 = arith.index_cast %427 : i32 to index
    %429 = memref.load %arg2[%428] : memref<64xi32, #tpu.memory_space<smem>>
    %430 = arith.index_cast %429 : i32 to index
    %c0_253 = arith.constant 0 : index
    %c0_254 = arith.constant 0 : index
    %431 = vector.load %arg4[%430, %c0_253, %c0_254] : memref<21x1x128xf32, #tpu.memory_space<vmem>>, vector<1x1x128xf32>
    %432 = vector.shape_cast %431 : vector<1x1x128xf32> to vector<1x128xf32>
    %c4_255 = arith.constant 4 : index
    %c7_256 = arith.constant 7 : index
    %c0_257 = arith.constant 0 : index
    %433 = vector.load %arg9[%c4_255, %c7_256, %c0_257] : memref<8x8x128xf32, #tpu.memory_space<vmem>>, vector<1x1x128xf32>
    %434 = vector.shape_cast %433 : vector<1x1x128xf32> to vector<1x128xf32>
    %435 = vector.shape_cast %432 : vector<1x128xf32> to vector<1x1x128xf32>
    tpu.vector_store %arg9[%c4_255, %c7_256, %c0_257], %435 {strides = array<i32>} : memref<8x8x128xf32, #tpu.memory_space<vmem>>, vector<1x1x128xf32>,
    %c5_i32_258 = arith.constant 5 : i32
    %436 = arith.addi %0, %c5_i32_258 : i32
    %437 = arith.index_cast %436 : i32 to index
    %438 = memref.load %arg1[%437] : memref<8xi32, #tpu.memory_space<smem>>
    %439 = arith.index_cast %438 : i32 to index
    %c0_259 = arith.constant 0 : index
    %c0_260 = arith.constant 0 : index
    %440 = vector.load %arg3[%439, %c0_259, %c0_260] : memref<11x1x128xf32, #tpu.memory_space<vmem>>, vector<1x1x128xf32>
    %441 = vector.shape_cast %440 : vector<1x1x128xf32> to vector<1x128xf32>
    %c5_261 = arith.constant 5 : index
    %c0_262 = arith.constant 0 : index
    %442 = vector.load %arg8[%c5_261, %c0_262] : memref<8x128xf32, #tpu.memory_space<vmem>>, vector<1x128xf32>
    tpu.vector_store %arg8[%c5_261, %c0_262], %441 {strides = array<i32>} : memref<8x128xf32, #tpu.memory_space<vmem>>, vector<1x128xf32>,
    %c8_i32_263 = arith.constant 8 : i32
    %443 = arith.muli %0, %c8_i32_263 : i32
    %c40_i32 = arith.constant 40 : i32
    %444 = arith.addi %443, %c40_i32 : i32
    %445 = arith.index_cast %444 : i32 to index
    %446 = memref.load %arg2[%445] : memref<64xi32, #tpu.memory_space<smem>>
    %447 = arith.index_cast %446 : i32 to index
    %c0_264 = arith.constant 0 : index
    %c0_265 = arith.constant 0 : index
    %448 = vector.load %arg4[%447, %c0_264, %c0_265] : memref<21x1x128xf32, #tpu.memory_space<vmem>>, vector<1x1x128xf32>
    %449 = vector.shape_cast %448 : vector<1x1x128xf32> to vector<1x128xf32>
    %c5_266 = arith.constant 5 : index
    %c0_267 = arith.constant 0 : index
    %c0_268 = arith.constant 0 : index
    %450 = vector.load %arg9[%c5_266, %c0_267, %c0_268] : memref<8x8x128xf32, #tpu.memory_space<vmem>>, vector<1x1x128xf32>
    %451 = vector.shape_cast %450 : vector<1x1x128xf32> to vector<1x128xf32>
    %452 = vector.shape_cast %449 : vector<1x128xf32> to vector<1x1x128xf32>
    tpu.vector_store %arg9[%c5_266, %c0_267, %c0_268], %452 {strides = array<i32>} : memref<8x8x128xf32, #tpu.memory_space<vmem>>, vector<1x1x128xf32>,
    %c8_i32_269 = arith.constant 8 : i32
    %453 = arith.muli %0, %c8_i32_269 : i32
    %c41_i32 = arith.constant 41 : i32
    %454 = arith.addi %453, %c41_i32 : i32
    %455 = arith.index_cast %454 : i32 to index
    %456 = memref.load %arg2[%455] : memref<64xi32, #tpu.memory_space<smem>>
    %457 = arith.index_cast %456 : i32 to index
    %c0_270 = arith.constant 0 : index
    %c0_271 = arith.constant 0 : index
    %458 = vector.load %arg4[%457, %c0_270, %c0_271] : memref<21x1x128xf32, #tpu.memory_space<vmem>>, vector<1x1x128xf32>
    %459 = vector.shape_cast %458 : vector<1x1x128xf32> to vector<1x128xf32>
    %c5_272 = arith.constant 5 : index
    %c1_273 = arith.constant 1 : index
    %c0_274 = arith.constant 0 : index
    %460 = vector.load %arg9[%c5_272, %c1_273, %c0_274] : memref<8x8x128xf32, #tpu.memory_space<vmem>>, vector<1x1x128xf32>
    %461 = vector.shape_cast %460 : vector<1x1x128xf32> to vector<1x128xf32>
    %462 = vector.shape_cast %459 : vector<1x128xf32> to vector<1x1x128xf32>
    tpu.vector_store %arg9[%c5_272, %c1_273, %c0_274], %462 {strides = array<i32>} : memref<8x8x128xf32, #tpu.memory_space<vmem>>, vector<1x1x128xf32>,
    %c8_i32_275 = arith.constant 8 : i32
    %463 = arith.muli %0, %c8_i32_275 : i32
    %c42_i32 = arith.constant 42 : i32
    %464 = arith.addi %463, %c42_i32 : i32
    %465 = arith.index_cast %464 : i32 to index
    %466 = memref.load %arg2[%465] : memref<64xi32, #tpu.memory_space<smem>>
    %467 = arith.index_cast %466 : i32 to index
    %c0_276 = arith.constant 0 : index
    %c0_277 = arith.constant 0 : index
    %468 = vector.load %arg4[%467, %c0_276, %c0_277] : memref<21x1x128xf32, #tpu.memory_space<vmem>>, vector<1x1x128xf32>
    %469 = vector.shape_cast %468 : vector<1x1x128xf32> to vector<1x128xf32>
    %c5_278 = arith.constant 5 : index
    %c2_279 = arith.constant 2 : index
    %c0_280 = arith.constant 0 : index
    %470 = vector.load %arg9[%c5_278, %c2_279, %c0_280] : memref<8x8x128xf32, #tpu.memory_space<vmem>>, vector<1x1x128xf32>
    %471 = vector.shape_cast %470 : vector<1x1x128xf32> to vector<1x128xf32>
    %472 = vector.shape_cast %469 : vector<1x128xf32> to vector<1x1x128xf32>
    tpu.vector_store %arg9[%c5_278, %c2_279, %c0_280], %472 {strides = array<i32>} : memref<8x8x128xf32, #tpu.memory_space<vmem>>, vector<1x1x128xf32>,
    %c8_i32_281 = arith.constant 8 : i32
    %473 = arith.muli %0, %c8_i32_281 : i32
    %c43_i32 = arith.constant 43 : i32
    %474 = arith.addi %473, %c43_i32 : i32
    %475 = arith.index_cast %474 : i32 to index
    %476 = memref.load %arg2[%475] : memref<64xi32, #tpu.memory_space<smem>>
    %477 = arith.index_cast %476 : i32 to index
    %c0_282 = arith.constant 0 : index
    %c0_283 = arith.constant 0 : index
    %478 = vector.load %arg4[%477, %c0_282, %c0_283] : memref<21x1x128xf32, #tpu.memory_space<vmem>>, vector<1x1x128xf32>
    %479 = vector.shape_cast %478 : vector<1x1x128xf32> to vector<1x128xf32>
    %c5_284 = arith.constant 5 : index
    %c3_285 = arith.constant 3 : index
    %c0_286 = arith.constant 0 : index
    %480 = vector.load %arg9[%c5_284, %c3_285, %c0_286] : memref<8x8x128xf32, #tpu.memory_space<vmem>>, vector<1x1x128xf32>
    %481 = vector.shape_cast %480 : vector<1x1x128xf32> to vector<1x128xf32>
    %482 = vector.shape_cast %479 : vector<1x128xf32> to vector<1x1x128xf32>
    tpu.vector_store %arg9[%c5_284, %c3_285, %c0_286], %482 {strides = array<i32>} : memref<8x8x128xf32, #tpu.memory_space<vmem>>, vector<1x1x128xf32>,
    %c8_i32_287 = arith.constant 8 : i32
    %483 = arith.muli %0, %c8_i32_287 : i32
    %c44_i32 = arith.constant 44 : i32
    %484 = arith.addi %483, %c44_i32 : i32
    %485 = arith.index_cast %484 : i32 to index
    %486 = memref.load %arg2[%485] : memref<64xi32, #tpu.memory_space<smem>>
    %487 = arith.index_cast %486 : i32 to index
    %c0_288 = arith.constant 0 : index
    %c0_289 = arith.constant 0 : index
    %488 = vector.load %arg4[%487, %c0_288, %c0_289] : memref<21x1x128xf32, #tpu.memory_space<vmem>>, vector<1x1x128xf32>
    %489 = vector.shape_cast %488 : vector<1x1x128xf32> to vector<1x128xf32>
    %c5_290 = arith.constant 5 : index
    %c4_291 = arith.constant 4 : index
    %c0_292 = arith.constant 0 : index
    %490 = vector.load %arg9[%c5_290, %c4_291, %c0_292] : memref<8x8x128xf32, #tpu.memory_space<vmem>>, vector<1x1x128xf32>
    %491 = vector.shape_cast %490 : vector<1x1x128xf32> to vector<1x128xf32>
    %492 = vector.shape_cast %489 : vector<1x128xf32> to vector<1x1x128xf32>
    tpu.vector_store %arg9[%c5_290, %c4_291, %c0_292], %492 {strides = array<i32>} : memref<8x8x128xf32, #tpu.memory_space<vmem>>, vector<1x1x128xf32>,
    %c8_i32_293 = arith.constant 8 : i32
    %493 = arith.muli %0, %c8_i32_293 : i32
    %c45_i32 = arith.constant 45 : i32
    %494 = arith.addi %493, %c45_i32 : i32
    %495 = arith.index_cast %494 : i32 to index
    %496 = memref.load %arg2[%495] : memref<64xi32, #tpu.memory_space<smem>>
    %497 = arith.index_cast %496 : i32 to index
    %c0_294 = arith.constant 0 : index
    %c0_295 = arith.constant 0 : index
    %498 = vector.load %arg4[%497, %c0_294, %c0_295] : memref<21x1x128xf32, #tpu.memory_space<vmem>>, vector<1x1x128xf32>
    %499 = vector.shape_cast %498 : vector<1x1x128xf32> to vector<1x128xf32>
    %c5_296 = arith.constant 5 : index
    %c5_297 = arith.constant 5 : index
    %c0_298 = arith.constant 0 : index
    %500 = vector.load %arg9[%c5_296, %c5_297, %c0_298] : memref<8x8x128xf32, #tpu.memory_space<vmem>>, vector<1x1x128xf32>
    %501 = vector.shape_cast %500 : vector<1x1x128xf32> to vector<1x128xf32>
    %502 = vector.shape_cast %499 : vector<1x128xf32> to vector<1x1x128xf32>
    tpu.vector_store %arg9[%c5_296, %c5_297, %c0_298], %502 {strides = array<i32>} : memref<8x8x128xf32, #tpu.memory_space<vmem>>, vector<1x1x128xf32>,
    %c8_i32_299 = arith.constant 8 : i32
    %503 = arith.muli %0, %c8_i32_299 : i32
    %c46_i32 = arith.constant 46 : i32
    %504 = arith.addi %503, %c46_i32 : i32
    %505 = arith.index_cast %504 : i32 to index
    %506 = memref.load %arg2[%505] : memref<64xi32, #tpu.memory_space<smem>>
    %507 = arith.index_cast %506 : i32 to index
    %c0_300 = arith.constant 0 : index
    %c0_301 = arith.constant 0 : index
    %508 = vector.load %arg4[%507, %c0_300, %c0_301] : memref<21x1x128xf32, #tpu.memory_space<vmem>>, vector<1x1x128xf32>
    %509 = vector.shape_cast %508 : vector<1x1x128xf32> to vector<1x128xf32>
    %c5_302 = arith.constant 5 : index
    %c6_303 = arith.constant 6 : index
    %c0_304 = arith.constant 0 : index
    %510 = vector.load %arg9[%c5_302, %c6_303, %c0_304] : memref<8x8x128xf32, #tpu.memory_space<vmem>>, vector<1x1x128xf32>
    %511 = vector.shape_cast %510 : vector<1x1x128xf32> to vector<1x128xf32>
    %512 = vector.shape_cast %509 : vector<1x128xf32> to vector<1x1x128xf32>
    tpu.vector_store %arg9[%c5_302, %c6_303, %c0_304], %512 {strides = array<i32>} : memref<8x8x128xf32, #tpu.memory_space<vmem>>, vector<1x1x128xf32>,
    %c8_i32_305 = arith.constant 8 : i32
    %513 = arith.muli %0, %c8_i32_305 : i32
    %c47_i32 = arith.constant 47 : i32
    %514 = arith.addi %513, %c47_i32 : i32
    %515 = arith.index_cast %514 : i32 to index
    %516 = memref.load %arg2[%515] : memref<64xi32, #tpu.memory_space<smem>>
    %517 = arith.index_cast %516 : i32 to index
    %c0_306 = arith.constant 0 : index
    %c0_307 = arith.constant 0 : index
    %518 = vector.load %arg4[%517, %c0_306, %c0_307] : memref<21x1x128xf32, #tpu.memory_space<vmem>>, vector<1x1x128xf32>
    %519 = vector.shape_cast %518 : vector<1x1x128xf32> to vector<1x128xf32>
    %c5_308 = arith.constant 5 : index
    %c7_309 = arith.constant 7 : index
    %c0_310 = arith.constant 0 : index
    %520 = vector.load %arg9[%c5_308, %c7_309, %c0_310] : memref<8x8x128xf32, #tpu.memory_space<vmem>>, vector<1x1x128xf32>
    %521 = vector.shape_cast %520 : vector<1x1x128xf32> to vector<1x128xf32>
    %522 = vector.shape_cast %519 : vector<1x128xf32> to vector<1x1x128xf32>
    tpu.vector_store %arg9[%c5_308, %c7_309, %c0_310], %522 {strides = array<i32>} : memref<8x8x128xf32, #tpu.memory_space<vmem>>, vector<1x1x128xf32>,
    %c6_i32_311 = arith.constant 6 : i32
    %523 = arith.addi %0, %c6_i32_311 : i32
    %524 = arith.index_cast %523 : i32 to index
    %525 = memref.load %arg1[%524] : memref<8xi32, #tpu.memory_space<smem>>
    %526 = arith.index_cast %525 : i32 to index
    %c0_312 = arith.constant 0 : index
    %c0_313 = arith.constant 0 : index
    %527 = vector.load %arg3[%526, %c0_312, %c0_313] : memref<11x1x128xf32, #tpu.memory_space<vmem>>, vector<1x1x128xf32>
    %528 = vector.shape_cast %527 : vector<1x1x128xf32> to vector<1x128xf32>
    %c6_314 = arith.constant 6 : index
    %c0_315 = arith.constant 0 : index
    %529 = vector.load %arg8[%c6_314, %c0_315] : memref<8x128xf32, #tpu.memory_space<vmem>>, vector<1x128xf32>
    tpu.vector_store %arg8[%c6_314, %c0_315], %528 {strides = array<i32>} : memref<8x128xf32, #tpu.memory_space<vmem>>, vector<1x128xf32>,
    %c8_i32_316 = arith.constant 8 : i32
    %530 = arith.muli %0, %c8_i32_316 : i32
    %c48_i32 = arith.constant 48 : i32
    %531 = arith.addi %530, %c48_i32 : i32
    %532 = arith.index_cast %531 : i32 to index
    %533 = memref.load %arg2[%532] : memref<64xi32, #tpu.memory_space<smem>>
    %534 = arith.index_cast %533 : i32 to index
    %c0_317 = arith.constant 0 : index
    %c0_318 = arith.constant 0 : index
    %535 = vector.load %arg4[%534, %c0_317, %c0_318] : memref<21x1x128xf32, #tpu.memory_space<vmem>>, vector<1x1x128xf32>
    %536 = vector.shape_cast %535 : vector<1x1x128xf32> to vector<1x128xf32>
    %c6_319 = arith.constant 6 : index
    %c0_320 = arith.constant 0 : index
    %c0_321 = arith.constant 0 : index
    %537 = vector.load %arg9[%c6_319, %c0_320, %c0_321] : memref<8x8x128xf32, #tpu.memory_space<vmem>>, vector<1x1x128xf32>
    %538 = vector.shape_cast %537 : vector<1x1x128xf32> to vector<1x128xf32>
    %539 = vector.shape_cast %536 : vector<1x128xf32> to vector<1x1x128xf32>
    tpu.vector_store %arg9[%c6_319, %c0_320, %c0_321], %539 {strides = array<i32>} : memref<8x8x128xf32, #tpu.memory_space<vmem>>, vector<1x1x128xf32>,
    %c8_i32_322 = arith.constant 8 : i32
    %540 = arith.muli %0, %c8_i32_322 : i32
    %c49_i32 = arith.constant 49 : i32
    %541 = arith.addi %540, %c49_i32 : i32
    %542 = arith.index_cast %541 : i32 to index
    %543 = memref.load %arg2[%542] : memref<64xi32, #tpu.memory_space<smem>>
    %544 = arith.index_cast %543 : i32 to index
    %c0_323 = arith.constant 0 : index
    %c0_324 = arith.constant 0 : index
    %545 = vector.load %arg4[%544, %c0_323, %c0_324] : memref<21x1x128xf32, #tpu.memory_space<vmem>>, vector<1x1x128xf32>
    %546 = vector.shape_cast %545 : vector<1x1x128xf32> to vector<1x128xf32>
    %c6_325 = arith.constant 6 : index
    %c1_326 = arith.constant 1 : index
    %c0_327 = arith.constant 0 : index
    %547 = vector.load %arg9[%c6_325, %c1_326, %c0_327] : memref<8x8x128xf32, #tpu.memory_space<vmem>>, vector<1x1x128xf32>
    %548 = vector.shape_cast %547 : vector<1x1x128xf32> to vector<1x128xf32>
    %549 = vector.shape_cast %546 : vector<1x128xf32> to vector<1x1x128xf32>
    tpu.vector_store %arg9[%c6_325, %c1_326, %c0_327], %549 {strides = array<i32>} : memref<8x8x128xf32, #tpu.memory_space<vmem>>, vector<1x1x128xf32>,
    %c8_i32_328 = arith.constant 8 : i32
    %550 = arith.muli %0, %c8_i32_328 : i32
    %c50_i32 = arith.constant 50 : i32
    %551 = arith.addi %550, %c50_i32 : i32
    %552 = arith.index_cast %551 : i32 to index
    %553 = memref.load %arg2[%552] : memref<64xi32, #tpu.memory_space<smem>>
    %554 = arith.index_cast %553 : i32 to index
    %c0_329 = arith.constant 0 : index
    %c0_330 = arith.constant 0 : index
    %555 = vector.load %arg4[%554, %c0_329, %c0_330] : memref<21x1x128xf32, #tpu.memory_space<vmem>>, vector<1x1x128xf32>
    %556 = vector.shape_cast %555 : vector<1x1x128xf32> to vector<1x128xf32>
    %c6_331 = arith.constant 6 : index
    %c2_332 = arith.constant 2 : index
    %c0_333 = arith.constant 0 : index
    %557 = vector.load %arg9[%c6_331, %c2_332, %c0_333] : memref<8x8x128xf32, #tpu.memory_space<vmem>>, vector<1x1x128xf32>
    %558 = vector.shape_cast %557 : vector<1x1x128xf32> to vector<1x128xf32>
    %559 = vector.shape_cast %556 : vector<1x128xf32> to vector<1x1x128xf32>
    tpu.vector_store %arg9[%c6_331, %c2_332, %c0_333], %559 {strides = array<i32>} : memref<8x8x128xf32, #tpu.memory_space<vmem>>, vector<1x1x128xf32>,
    %c8_i32_334 = arith.constant 8 : i32
    %560 = arith.muli %0, %c8_i32_334 : i32
    %c51_i32 = arith.constant 51 : i32
    %561 = arith.addi %560, %c51_i32 : i32
    %562 = arith.index_cast %561 : i32 to index
    %563 = memref.load %arg2[%562] : memref<64xi32, #tpu.memory_space<smem>>
    %564 = arith.index_cast %563 : i32 to index
    %c0_335 = arith.constant 0 : index
    %c0_336 = arith.constant 0 : index
    %565 = vector.load %arg4[%564, %c0_335, %c0_336] : memref<21x1x128xf32, #tpu.memory_space<vmem>>, vector<1x1x128xf32>
    %566 = vector.shape_cast %565 : vector<1x1x128xf32> to vector<1x128xf32>
    %c6_337 = arith.constant 6 : index
    %c3_338 = arith.constant 3 : index
    %c0_339 = arith.constant 0 : index
    %567 = vector.load %arg9[%c6_337, %c3_338, %c0_339] : memref<8x8x128xf32, #tpu.memory_space<vmem>>, vector<1x1x128xf32>
    %568 = vector.shape_cast %567 : vector<1x1x128xf32> to vector<1x128xf32>
    %569 = vector.shape_cast %566 : vector<1x128xf32> to vector<1x1x128xf32>
    tpu.vector_store %arg9[%c6_337, %c3_338, %c0_339], %569 {strides = array<i32>} : memref<8x8x128xf32, #tpu.memory_space<vmem>>, vector<1x1x128xf32>,
    %c8_i32_340 = arith.constant 8 : i32
    %570 = arith.muli %0, %c8_i32_340 : i32
    %c52_i32 = arith.constant 52 : i32
    %571 = arith.addi %570, %c52_i32 : i32
    %572 = arith.index_cast %571 : i32 to index
    %573 = memref.load %arg2[%572] : memref<64xi32, #tpu.memory_space<smem>>
    %574 = arith.index_cast %573 : i32 to index
    %c0_341 = arith.constant 0 : index
    %c0_342 = arith.constant 0 : index
    %575 = vector.load %arg4[%574, %c0_341, %c0_342] : memref<21x1x128xf32, #tpu.memory_space<vmem>>, vector<1x1x128xf32>
    %576 = vector.shape_cast %575 : vector<1x1x128xf32> to vector<1x128xf32>
    %c6_343 = arith.constant 6 : index
    %c4_344 = arith.constant 4 : index
    %c0_345 = arith.constant 0 : index
    %577 = vector.load %arg9[%c6_343, %c4_344, %c0_345] : memref<8x8x128xf32, #tpu.memory_space<vmem>>, vector<1x1x128xf32>
    %578 = vector.shape_cast %577 : vector<1x1x128xf32> to vector<1x128xf32>
    %579 = vector.shape_cast %576 : vector<1x128xf32> to vector<1x1x128xf32>
    tpu.vector_store %arg9[%c6_343, %c4_344, %c0_345], %579 {strides = array<i32>} : memref<8x8x128xf32, #tpu.memory_space<vmem>>, vector<1x1x128xf32>,
    %c8_i32_346 = arith.constant 8 : i32
    %580 = arith.muli %0, %c8_i32_346 : i32
    %c53_i32 = arith.constant 53 : i32
    %581 = arith.addi %580, %c53_i32 : i32
    %582 = arith.index_cast %581 : i32 to index
    %583 = memref.load %arg2[%582] : memref<64xi32, #tpu.memory_space<smem>>
    %584 = arith.index_cast %583 : i32 to index
    %c0_347 = arith.constant 0 : index
    %c0_348 = arith.constant 0 : index
    %585 = vector.load %arg4[%584, %c0_347, %c0_348] : memref<21x1x128xf32, #tpu.memory_space<vmem>>, vector<1x1x128xf32>
    %586 = vector.shape_cast %585 : vector<1x1x128xf32> to vector<1x128xf32>
    %c6_349 = arith.constant 6 : index
    %c5_350 = arith.constant 5 : index
    %c0_351 = arith.constant 0 : index
    %587 = vector.load %arg9[%c6_349, %c5_350, %c0_351] : memref<8x8x128xf32, #tpu.memory_space<vmem>>, vector<1x1x128xf32>
    %588 = vector.shape_cast %587 : vector<1x1x128xf32> to vector<1x128xf32>
    %589 = vector.shape_cast %586 : vector<1x128xf32> to vector<1x1x128xf32>
    tpu.vector_store %arg9[%c6_349, %c5_350, %c0_351], %589 {strides = array<i32>} : memref<8x8x128xf32, #tpu.memory_space<vmem>>, vector<1x1x128xf32>,
    %c8_i32_352 = arith.constant 8 : i32
    %590 = arith.muli %0, %c8_i32_352 : i32
    %c54_i32 = arith.constant 54 : i32
    %591 = arith.addi %590, %c54_i32 : i32
    %592 = arith.index_cast %591 : i32 to index
    %593 = memref.load %arg2[%592] : memref<64xi32, #tpu.memory_space<smem>>
    %594 = arith.index_cast %593 : i32 to index
    %c0_353 = arith.constant 0 : index
    %c0_354 = arith.constant 0 : index
    %595 = vector.load %arg4[%594, %c0_353, %c0_354] : memref<21x1x128xf32, #tpu.memory_space<vmem>>, vector<1x1x128xf32>
    %596 = vector.shape_cast %595 : vector<1x1x128xf32> to vector<1x128xf32>
    %c6_355 = arith.constant 6 : index
    %c6_356 = arith.constant 6 : index
    %c0_357 = arith.constant 0 : index
    %597 = vector.load %arg9[%c6_355, %c6_356, %c0_357] : memref<8x8x128xf32, #tpu.memory_space<vmem>>, vector<1x1x128xf32>
    %598 = vector.shape_cast %597 : vector<1x1x128xf32> to vector<1x128xf32>
    %599 = vector.shape_cast %596 : vector<1x128xf32> to vector<1x1x128xf32>
    tpu.vector_store %arg9[%c6_355, %c6_356, %c0_357], %599 {strides = array<i32>} : memref<8x8x128xf32, #tpu.memory_space<vmem>>, vector<1x1x128xf32>,
    %c8_i32_358 = arith.constant 8 : i32
    %600 = arith.muli %0, %c8_i32_358 : i32
    %c55_i32 = arith.constant 55 : i32
    %601 = arith.addi %600, %c55_i32 : i32
    %602 = arith.index_cast %601 : i32 to index
    %603 = memref.load %arg2[%602] : memref<64xi32, #tpu.memory_space<smem>>
    %604 = arith.index_cast %603 : i32 to index
    %c0_359 = arith.constant 0 : index
    %c0_360 = arith.constant 0 : index
    %605 = vector.load %arg4[%604, %c0_359, %c0_360] : memref<21x1x128xf32, #tpu.memory_space<vmem>>, vector<1x1x128xf32>
    %606 = vector.shape_cast %605 : vector<1x1x128xf32> to vector<1x128xf32>
    %c6_361 = arith.constant 6 : index
    %c7_362 = arith.constant 7 : index
    %c0_363 = arith.constant 0 : index
    %607 = vector.load %arg9[%c6_361, %c7_362, %c0_363] : memref<8x8x128xf32, #tpu.memory_space<vmem>>, vector<1x1x128xf32>
    %608 = vector.shape_cast %607 : vector<1x1x128xf32> to vector<1x128xf32>
    %609 = vector.shape_cast %606 : vector<1x128xf32> to vector<1x1x128xf32>
    tpu.vector_store %arg9[%c6_361, %c7_362, %c0_363], %609 {strides = array<i32>} : memref<8x8x128xf32, #tpu.memory_space<vmem>>, vector<1x1x128xf32>,
    %c7_i32_364 = arith.constant 7 : i32
    %610 = arith.addi %0, %c7_i32_364 : i32
    %611 = arith.index_cast %610 : i32 to index
    %612 = memref.load %arg1[%611] : memref<8xi32, #tpu.memory_space<smem>>
    %613 = arith.index_cast %612 : i32 to index
    %c0_365 = arith.constant 0 : index
    %c0_366 = arith.constant 0 : index
    %614 = vector.load %arg3[%613, %c0_365, %c0_366] : memref<11x1x128xf32, #tpu.memory_space<vmem>>, vector<1x1x128xf32>
    %615 = vector.shape_cast %614 : vector<1x1x128xf32> to vector<1x128xf32>
    %c7_367 = arith.constant 7 : index
    %c0_368 = arith.constant 0 : index
    %616 = vector.load %arg8[%c7_367, %c0_368] : memref<8x128xf32, #tpu.memory_space<vmem>>, vector<1x128xf32>
    tpu.vector_store %arg8[%c7_367, %c0_368], %615 {strides = array<i32>} : memref<8x128xf32, #tpu.memory_space<vmem>>, vector<1x128xf32>,
    %c8_i32_369 = arith.constant 8 : i32
    %617 = arith.muli %0, %c8_i32_369 : i32
    %c56_i32 = arith.constant 56 : i32
    %618 = arith.addi %617, %c56_i32 : i32
    %619 = arith.index_cast %618 : i32 to index
    %620 = memref.load %arg2[%619] : memref<64xi32, #tpu.memory_space<smem>>
    %621 = arith.index_cast %620 : i32 to index
    %c0_370 = arith.constant 0 : index
    %c0_371 = arith.constant 0 : index
    %622 = vector.load %arg4[%621, %c0_370, %c0_371] : memref<21x1x128xf32, #tpu.memory_space<vmem>>, vector<1x1x128xf32>
    %623 = vector.shape_cast %622 : vector<1x1x128xf32> to vector<1x128xf32>
    %c7_372 = arith.constant 7 : index
    %c0_373 = arith.constant 0 : index
    %c0_374 = arith.constant 0 : index
    %624 = vector.load %arg9[%c7_372, %c0_373, %c0_374] : memref<8x8x128xf32, #tpu.memory_space<vmem>>, vector<1x1x128xf32>
    %625 = vector.shape_cast %624 : vector<1x1x128xf32> to vector<1x128xf32>
    %626 = vector.shape_cast %623 : vector<1x128xf32> to vector<1x1x128xf32>
    tpu.vector_store %arg9[%c7_372, %c0_373, %c0_374], %626 {strides = array<i32>} : memref<8x8x128xf32, #tpu.memory_space<vmem>>, vector<1x1x128xf32>,
    %c8_i32_375 = arith.constant 8 : i32
    %627 = arith.muli %0, %c8_i32_375 : i32
    %c57_i32 = arith.constant 57 : i32
    %628 = arith.addi %627, %c57_i32 : i32
    %629 = arith.index_cast %628 : i32 to index
    %630 = memref.load %arg2[%629] : memref<64xi32, #tpu.memory_space<smem>>
    %631 = arith.index_cast %630 : i32 to index
    %c0_376 = arith.constant 0 : index
    %c0_377 = arith.constant 0 : index
    %632 = vector.load %arg4[%631, %c0_376, %c0_377] : memref<21x1x128xf32, #tpu.memory_space<vmem>>, vector<1x1x128xf32>
    %633 = vector.shape_cast %632 : vector<1x1x128xf32> to vector<1x128xf32>
    %c7_378 = arith.constant 7 : index
    %c1_379 = arith.constant 1 : index
    %c0_380 = arith.constant 0 : index
    %634 = vector.load %arg9[%c7_378, %c1_379, %c0_380] : memref<8x8x128xf32, #tpu.memory_space<vmem>>, vector<1x1x128xf32>
    %635 = vector.shape_cast %634 : vector<1x1x128xf32> to vector<1x128xf32>
    %636 = vector.shape_cast %633 : vector<1x128xf32> to vector<1x1x128xf32>
    tpu.vector_store %arg9[%c7_378, %c1_379, %c0_380], %636 {strides = array<i32>} : memref<8x8x128xf32, #tpu.memory_space<vmem>>, vector<1x1x128xf32>,
    %c8_i32_381 = arith.constant 8 : i32
    %637 = arith.muli %0, %c8_i32_381 : i32
    %c58_i32 = arith.constant 58 : i32
    %638 = arith.addi %637, %c58_i32 : i32
    %639 = arith.index_cast %638 : i32 to index
    %640 = memref.load %arg2[%639] : memref<64xi32, #tpu.memory_space<smem>>
    %641 = arith.index_cast %640 : i32 to index
    %c0_382 = arith.constant 0 : index
    %c0_383 = arith.constant 0 : index
    %642 = vector.load %arg4[%641, %c0_382, %c0_383] : memref<21x1x128xf32, #tpu.memory_space<vmem>>, vector<1x1x128xf32>
    %643 = vector.shape_cast %642 : vector<1x1x128xf32> to vector<1x128xf32>
    %c7_384 = arith.constant 7 : index
    %c2_385 = arith.constant 2 : index
    %c0_386 = arith.constant 0 : index
    %644 = vector.load %arg9[%c7_384, %c2_385, %c0_386] : memref<8x8x128xf32, #tpu.memory_space<vmem>>, vector<1x1x128xf32>
    %645 = vector.shape_cast %644 : vector<1x1x128xf32> to vector<1x128xf32>
    %646 = vector.shape_cast %643 : vector<1x128xf32> to vector<1x1x128xf32>
    tpu.vector_store %arg9[%c7_384, %c2_385, %c0_386], %646 {strides = array<i32>} : memref<8x8x128xf32, #tpu.memory_space<vmem>>, vector<1x1x128xf32>,
    %c8_i32_387 = arith.constant 8 : i32
    %647 = arith.muli %0, %c8_i32_387 : i32
    %c59_i32 = arith.constant 59 : i32
    %648 = arith.addi %647, %c59_i32 : i32
    %649 = arith.index_cast %648 : i32 to index
    %650 = memref.load %arg2[%649] : memref<64xi32, #tpu.memory_space<smem>>
    %651 = arith.index_cast %650 : i32 to index
    %c0_388 = arith.constant 0 : index
    %c0_389 = arith.constant 0 : index
    %652 = vector.load %arg4[%651, %c0_388, %c0_389] : memref<21x1x128xf32, #tpu.memory_space<vmem>>, vector<1x1x128xf32>
    %653 = vector.shape_cast %652 : vector<1x1x128xf32> to vector<1x128xf32>
    %c7_390 = arith.constant 7 : index
    %c3_391 = arith.constant 3 : index
    %c0_392 = arith.constant 0 : index
    %654 = vector.load %arg9[%c7_390, %c3_391, %c0_392] : memref<8x8x128xf32, #tpu.memory_space<vmem>>, vector<1x1x128xf32>
    %655 = vector.shape_cast %654 : vector<1x1x128xf32> to vector<1x128xf32>
    %656 = vector.shape_cast %653 : vector<1x128xf32> to vector<1x1x128xf32>
    tpu.vector_store %arg9[%c7_390, %c3_391, %c0_392], %656 {strides = array<i32>} : memref<8x8x128xf32, #tpu.memory_space<vmem>>, vector<1x1x128xf32>,
    %c8_i32_393 = arith.constant 8 : i32
    %657 = arith.muli %0, %c8_i32_393 : i32
    %c60_i32 = arith.constant 60 : i32
    %658 = arith.addi %657, %c60_i32 : i32
    %659 = arith.index_cast %658 : i32 to index
    %660 = memref.load %arg2[%659] : memref<64xi32, #tpu.memory_space<smem>>
    %661 = arith.index_cast %660 : i32 to index
    %c0_394 = arith.constant 0 : index
    %c0_395 = arith.constant 0 : index
    %662 = vector.load %arg4[%661, %c0_394, %c0_395] : memref<21x1x128xf32, #tpu.memory_space<vmem>>, vector<1x1x128xf32>
    %663 = vector.shape_cast %662 : vector<1x1x128xf32> to vector<1x128xf32>
    %c7_396 = arith.constant 7 : index
    %c4_397 = arith.constant 4 : index
    %c0_398 = arith.constant 0 : index
    %664 = vector.load %arg9[%c7_396, %c4_397, %c0_398] : memref<8x8x128xf32, #tpu.memory_space<vmem>>, vector<1x1x128xf32>
    %665 = vector.shape_cast %664 : vector<1x1x128xf32> to vector<1x128xf32>
    %666 = vector.shape_cast %663 : vector<1x128xf32> to vector<1x1x128xf32>
    tpu.vector_store %arg9[%c7_396, %c4_397, %c0_398], %666 {strides = array<i32>} : memref<8x8x128xf32, #tpu.memory_space<vmem>>, vector<1x1x128xf32>,
    %c8_i32_399 = arith.constant 8 : i32
    %667 = arith.muli %0, %c8_i32_399 : i32
    %c61_i32 = arith.constant 61 : i32
    %668 = arith.addi %667, %c61_i32 : i32
    %669 = arith.index_cast %668 : i32 to index
    %670 = memref.load %arg2[%669] : memref<64xi32, #tpu.memory_space<smem>>
    %671 = arith.index_cast %670 : i32 to index
    %c0_400 = arith.constant 0 : index
    %c0_401 = arith.constant 0 : index
    %672 = vector.load %arg4[%671, %c0_400, %c0_401] : memref<21x1x128xf32, #tpu.memory_space<vmem>>, vector<1x1x128xf32>
    %673 = vector.shape_cast %672 : vector<1x1x128xf32> to vector<1x128xf32>
    %c7_402 = arith.constant 7 : index
    %c5_403 = arith.constant 5 : index
    %c0_404 = arith.constant 0 : index
    %674 = vector.load %arg9[%c7_402, %c5_403, %c0_404] : memref<8x8x128xf32, #tpu.memory_space<vmem>>, vector<1x1x128xf32>
    %675 = vector.shape_cast %674 : vector<1x1x128xf32> to vector<1x128xf32>
    %676 = vector.shape_cast %673 : vector<1x128xf32> to vector<1x1x128xf32>
    tpu.vector_store %arg9[%c7_402, %c5_403, %c0_404], %676 {strides = array<i32>} : memref<8x8x128xf32, #tpu.memory_space<vmem>>, vector<1x1x128xf32>,
    %c8_i32_405 = arith.constant 8 : i32
    %677 = arith.muli %0, %c8_i32_405 : i32
    %c62_i32 = arith.constant 62 : i32
    %678 = arith.addi %677, %c62_i32 : i32
    %679 = arith.index_cast %678 : i32 to index
    %680 = memref.load %arg2[%679] : memref<64xi32, #tpu.memory_space<smem>>
    %681 = arith.index_cast %680 : i32 to index
    %c0_406 = arith.constant 0 : index
    %c0_407 = arith.constant 0 : index
    %682 = vector.load %arg4[%681, %c0_406, %c0_407] : memref<21x1x128xf32, #tpu.memory_space<vmem>>, vector<1x1x128xf32>
    %683 = vector.shape_cast %682 : vector<1x1x128xf32> to vector<1x128xf32>
    %c7_408 = arith.constant 7 : index
    %c6_409 = arith.constant 6 : index
    %c0_410 = arith.constant 0 : index
    %684 = vector.load %arg9[%c7_408, %c6_409, %c0_410] : memref<8x8x128xf32, #tpu.memory_space<vmem>>, vector<1x1x128xf32>
    %685 = vector.shape_cast %684 : vector<1x1x128xf32> to vector<1x128xf32>
    %686 = vector.shape_cast %683 : vector<1x128xf32> to vector<1x1x128xf32>
    tpu.vector_store %arg9[%c7_408, %c6_409, %c0_410], %686 {strides = array<i32>} : memref<8x8x128xf32, #tpu.memory_space<vmem>>, vector<1x1x128xf32>,
    %c8_i32_411 = arith.constant 8 : i32
    %687 = arith.muli %0, %c8_i32_411 : i32
    %c63_i32 = arith.constant 63 : i32
    %688 = arith.addi %687, %c63_i32 : i32
    %689 = arith.index_cast %688 : i32 to index
    %690 = memref.load %arg2[%689] : memref<64xi32, #tpu.memory_space<smem>>
    %691 = arith.index_cast %690 : i32 to index
    %c0_412 = arith.constant 0 : index
    %c0_413 = arith.constant 0 : index
    %692 = vector.load %arg4[%691, %c0_412, %c0_413] : memref<21x1x128xf32, #tpu.memory_space<vmem>>, vector<1x1x128xf32>
    %693 = vector.shape_cast %692 : vector<1x1x128xf32> to vector<1x128xf32>
    %c7_414 = arith.constant 7 : index
    %c7_415 = arith.constant 7 : index
    %c0_416 = arith.constant 0 : index
    %694 = vector.load %arg9[%c7_414, %c7_415, %c0_416] : memref<8x8x128xf32, #tpu.memory_space<vmem>>, vector<1x1x128xf32>
    %695 = vector.shape_cast %694 : vector<1x1x128xf32> to vector<1x128xf32>
    %696 = vector.shape_cast %693 : vector<1x128xf32> to vector<1x1x128xf32>
    tpu.vector_store %arg9[%c7_414, %c7_415, %c0_416], %696 {strides = array<i32>} : memref<8x8x128xf32, #tpu.memory_space<vmem>>, vector<1x1x128xf32>,
    %c0_417 = arith.constant 0 : index
    %c0_418 = arith.constant 0 : index
    %697 = vector.load %arg8[%c0_417, %c0_418] : memref<8x128xf32, #tpu.memory_space<vmem>>, vector<8x128xf32>
    %c0_419 = arith.constant 0 : index
    %c0_420 = arith.constant 0 : index
    %c0_421 = arith.constant 0 : index
    %698 = vector.load %arg9[%c0_419, %c0_420, %c0_421] : memref<8x8x128xf32, #tpu.memory_space<vmem>>, vector<8x8x128xf32>
    %699 = vector.shape_cast %697 : vector<8x128xf32> to vector<8x1x128xf32>
    %700 = vector.broadcast %699 : vector<8x1x128xf32> to vector<8x8x128xf32>
    %701 = arith.mulf %698, %700 : vector<8x8x128xf32>
    %cst = arith.constant dense<0.000000e+00> : vector<8x8xf32>
    %702 = vector.multi_reduction <add>, %701, %cst [2] : vector<8x8x128xf32> to vector<8x8xf32>
    %c0_422 = arith.constant 0 : index
    %c0_423 = arith.constant 0 : index
    %703 = vector.load %arg7[%c0_422, %c0_423] : memref<8x8xf32, #tpu.memory_space<vmem>>, vector<8x8xf32>
    tpu.vector_store %arg7[%c0_422, %c0_423], %702 {strides = array<i32>} : memref<8x8xf32, #tpu.memory_space<vmem>>, vector<8x8xf32>,
    %cst_424 = arith.constant dense<0xFF800000> : vector<8xf32>
    %704 = vector.multi_reduction <maximumf>, %702, %cst_424 [1] : vector<8x8xf32> to vector<8xf32>
    %705 = vector.shape_cast %704 : vector<8xf32> to vector<8x1xf32>
    %706 = vector.broadcast %705 : vector<8x1xf32> to vector<8x8xf32>
    %707 = arith.subf %702, %706 : vector<8x8xf32>
    %708 = math.exp %707 : vector<8x8xf32>
    %cst_425 = arith.constant dense<0.000000e+00> : vector<8xf32>
    %709 = vector.multi_reduction <add>, %708, %cst_425 [1] : vector<8x8xf32> to vector<8xf32>
    %710 = vector.shape_cast %709 : vector<8xf32> to vector<8x1xf32>
    %711 = math.log %710 : vector<8x1xf32>
    %712 = arith.addf %705, %711 : vector<8x1xf32>
    %713 = tpu.iota {dimensions = array<i32: 1>} : vector<8x8xi32>
    %c0_426 = arith.constant 0 : index
    %c0_427 = arith.constant 0 : index
    %714 = vector.load %arg5[%c0_426, %c0_427] : memref<8x1xi32, #tpu.memory_space<vmem>>, vector<8x1xi32>
    %715 = vector.broadcast %714 : vector<8x1xi32> to vector<8x8xi32>
    %716 = arith.cmpi eq, %713, %715 : vector<8x8xi32>
    %717 = arith.extui %716 : vector<8x8xi1> to vector<8x8xi32>
    %718 = arith.sitofp %717 : vector<8x8xi32> to vector<8x8xf32>
    %719 = arith.mulf %702, %718 : vector<8x8xf32>
    %cst_428 = arith.constant dense<0.000000e+00> : vector<8xf32>
    %720 = vector.multi_reduction <add>, %719, %cst_428 [1] : vector<8x8xf32> to vector<8xf32>
    %721 = vector.shape_cast %720 : vector<8xf32> to vector<8x1xf32>
    %722 = tpu.iota {dimensions = array<i32: 0>} : vector<8x1xi32>
    %723 = vector.broadcast %0 : i32 to vector<8x1xi32>
    %724 = arith.addi %722, %723 : vector<8x1xi32>
    %c2_i32_429 = arith.constant 2 : i32
    %725 = vector.broadcast %c2_i32_429 : i32 to vector<8x1xi32>
    %726 = arith.cmpi slt, %724, %725 : vector<8x1xi32>
    %727 = arith.extui %726 : vector<8x1xi1> to vector<8x1xi32>
    %728 = arith.sitofp %727 : vector<8x1xi32> to vector<8x1xf32>
    %729 = arith.subf %712, %721 : vector<8x1xf32>
    %730 = arith.mulf %729, %728 : vector<8x1xf32>
    %731 = vector.shape_cast %730 : vector<8x1xf32> to vector<1x8x1xf32>
    %cst_430 = arith.constant dense<0.000000e+00> : vector<1xf32>
    %732 = vector.multi_reduction <add>, %731, %cst_430 [1, 2] : vector<1x8x1xf32> to vector<1xf32>
    %733 = vector.shape_cast %732 : vector<1xf32> to vector<1x1x1xf32>
    %734 = vector.extract %733[0, 0, 0] : f32 from vector<1x1x1xf32>
    %735 = vector.broadcast %734 : f32 to vector<1x1xf32>
    %c0_i32_431 = arith.constant 0 : i32
    %736 = arith.cmpi eq, %arg0, %c0_i32_431 : i32
    %737 = arith.extui %736 : i1 to i32
    %c0_i32_432 = arith.constant 0 : i32
    %738 = arith.cmpi ne, %737, %c0_i32_432 : i32
    scf.if %738 {
      %cst_439 = arith.constant 0.000000e+00 : f32
      %745 = vector.broadcast %cst_439 : f32 to vector<1x1xf32>
      %c0_440 = arith.constant 0 : index
      %c0_441 = arith.constant 0 : index
      %746 = vector.load %arg10[%c0_440, %c0_441] : memref<1x1xf32, #tpu.memory_space<vmem>>, vector<1x1xf32>
      tpu.vector_store %arg10[%c0_440, %c0_441], %745 {strides = array<i32>} : memref<1x1xf32, #tpu.memory_space<vmem>>, vector<1x1xf32>,
    } else {
    }
    %c0_433 = arith.constant 0 : index
    %c0_434 = arith.constant 0 : index
    %739 = vector.load %arg10[%c0_433, %c0_434] : memref<1x1xf32, #tpu.memory_space<vmem>>, vector<1x1xf32>
    %740 = arith.addf %739, %735 : vector<1x1xf32>
    %c0_435 = arith.constant 0 : index
    %c0_436 = arith.constant 0 : index
    %741 = vector.load %arg10[%c0_435, %c0_436] : memref<1x1xf32, #tpu.memory_space<vmem>>, vector<1x1xf32>
    tpu.vector_store %arg10[%c0_435, %c0_436], %740 {strides = array<i32>} : memref<1x1xf32, #tpu.memory_space<vmem>>, vector<1x1xf32>,
    %c0_i32_437 = arith.constant 0 : i32
    %742 = arith.cmpi eq, %arg0, %c0_i32_437 : i32
    %743 = arith.extui %742 : i1 to i32
    %c0_i32_438 = arith.constant 0 : i32
    %744 = arith.cmpi ne, %743, %c0_i32_438 : i32
    scf.if %744 {
      %c0_439 = arith.constant 0 : index
      %c0_440 = arith.constant 0 : index
      %745 = vector.load %arg10[%c0_439, %c0_440] : memref<1x1xf32, #tpu.memory_space<vmem>>, vector<1x1xf32>
      %cst_441 = arith.constant 5.000000e-01 : f32
      %746 = vector.broadcast %cst_441 : f32 to vector<1x1xf32>
      %747 = arith.mulf %745, %746 : vector<1x1xf32>
      %c0_442 = arith.constant 0 : index
      %c0_443 = arith.constant 0 : index
      %748 = vector.load %arg6[%c0_442, %c0_443] : memref<1x1xf32, #tpu.memory_space<vmem>>, vector<1x1xf32>
      tpu.vector_store %arg6[%c0_442, %c0_443], %747 {strides = array<i32>} : memref<1x1xf32, #tpu.memory_space<vmem>>, vector<1x1xf32>,
    } else {
    }
    return
  }
  func.func @transform_0(%arg0: i32, %arg1: memref<8xi32, #tpu.memory_space<smem>>, %arg2: memref<64xi32, #tpu.memory_space<smem>>) -> (i32, i32, i32) {
    %c0_i32 = arith.constant 0 : i32
    %c0_i32_0 = arith.constant 0 : i32
    %c0_i32_1 = arith.constant 0 : i32
    %c0_i32_2 = arith.constant 0 : i32
    return %c0_i32, %c0_i32_0, %c0_i32_1 : i32, i32, i32
  }
  func.func @transform_1(%arg0: i32, %arg1: memref<8xi32, #tpu.memory_space<smem>>, %arg2: memref<64xi32, #tpu.memory_space<smem>>) -> (i32, i32, i32) {
    %c0_i32 = arith.constant 0 : i32
    %c0_i32_0 = arith.constant 0 : i32
    %c0_i32_1 = arith.constant 0 : i32
    %c0_i32_2 = arith.constant 0 : i32
    return %c0_i32, %c0_i32_0, %c0_i32_1 : i32, i32, i32
  }
  func.func @transform_2(%arg0: i32, %arg1: memref<8xi32, #tpu.memory_space<smem>>, %arg2: memref<64xi32, #tpu.memory_space<smem>>) -> (i32, i32) {
    %c0_i32 = arith.constant 0 : i32
    %c0_i32_0 = arith.constant 0 : i32
    return %arg0, %c0_i32 : i32, i32
  }
  func.func @transform_3(%arg0: i32, %arg1: memref<8xi32, #tpu.memory_space<smem>>, %arg2: memref<64xi32, #tpu.memory_space<smem>>) -> (i32, i32) {
    %c0_i32 = arith.constant 0 : i32
    %c0_i32_0 = arith.constant 0 : i32
    %c0_i32_1 = arith.constant 0 : i32
    return %c0_i32, %c0_i32_0 : i32, i32
  }
  func.func @transform_4(%arg0: i32, %arg1: memref<8xi32, #tpu.memory_space<smem>>, %arg2: memref<64xi32, #tpu.memory_space<smem>>) -> (i32, i32) {
    %c0_i32 = arith.constant 0 : i32
    %c0_i32_0 = arith.constant 0 : i32
    return %arg0, %c0_i32 : i32, i32
  }
}

</mosaic_0001>

<bundles_post_ra>
// kernel: tpu_custom_call.1
= control target key start
LH: loop header
LB: loop body
LE: loop exit
PB: predicated region body
PF: predicated region fallthrough
CT: control target
= control target key end

     0   :  { %s1625_s0 = inlined_call_operand.vmem [shape: s32[8], index: 0, kind: input, shape index: {}]   ;;  %s1626_s2 = inlined_call_operand.vmem [shape: f32[11,1,128], index: 2, kind: input, shape index: {}]   ;;  %s1627_s3 = inlined_call_operand.hbm [shape: f32[21,1,128], index: 3, kind: input, shape index: {}]   ;;  %s1628_s4 = inlined_call_operand.vmem [shape: s32[8,1], index: 4, kind: input, shape index: {}]   ;;  %s1629_s5 = inlined_call_operand.hbm [shape: f32[1,1], index: 5, kind: output, shape index: {0}]   ;;  %s1630_s6 = inlined_call_operand.hbm [shape: f32[8,8], index: 6, kind: output, shape index: {1}]   ;;  %s1631_s1 = inlined_call_operand.vmem [shape: s32[64], index: 1, kind: input, shape index: {}]  }
   0x1   :  { %s12_s23 = sshll.u32 %s1625_s0, 4  ;;  %s16_s26 = sshll.u32 %s1631_s1, 4  ;;  %s13_s23 = int_to_ptr.vmem [resolvable:$true] %s12_s23  ;;  %s17_s26 = int_to_ptr.vmem [resolvable:$true] %s16_s26 }
   0x2   :  { %s1137_s27 = scalar_lea.vmem %s13_s23, 16  ;;  %p1142_p1 = scmp.lt.s32.totalorder %s13_s23, %s13_s23 }
   0x3   :  { %p1138_p0 = scmp.ne.s32.totalorder %s13_s23, %s1137_s27  ;;  %p1143_p2 = scmp.lt.s32.totalorder %s1137_s27, %s1137_s27 }
   0x5   :  { %p1144_p3 = por %p1143_p2, %p1142_p1 }
   0x7   :  { %p1145_p4 = pnand %p1144_p3, %p1138_p0 }
   0x9   :  { %1148 = shalt.err (!%p1145_p4)  }
   0xa   :  { %s1235_s28 = smov [#allocation6]   ;;  %s1149_s29 = scalar_lea.vmem %s17_s26, 16 }
   0xb   :  { %15 = dma.vmem_to_smem %s13_s23, 16, %s1235_s28, [#allocation5] }
   0xc   :  { %p1150_p5 = scmp.ne.s32.totalorder %s17_s26, %s1149_s29  ;;  %p1154_p6 = scmp.lt.s32.totalorder %s17_s26, %s17_s26 }
   0xd   :  { %p1155_p7 = scmp.lt.s32.totalorder %s1149_s29, %s1149_s29 }
   0xf   :  { %p1156_p8 = por %p1155_p7, %p1154_p6 }
  0x11   :  { %p1157_p9 = pnand %p1156_p8, %p1150_p5 }
  0x13   :  { %1160 = shalt.err (!%p1157_p9)  }
  0x14   :  { %s1236_s0 = smov [#allocation7]  }
  0x15   :  { %19 = dma.vmem_to_smem %s17_s26, 16, %s1236_s0, [#allocation5] }
  0x16   :  { %1227 = dma.done.wait [#allocation5], 32 }
  0x17   :  { %1228 = vsyncadd [#allocation5], 4294967264 }
  0x18   :  { %21 = sfence }
  0x19   :  { %22 = vsyncpa [#allocation9], 0 }
  0x1a   :  { %23 = vsyncpa [#allocation10], 0 }
  0x1b   :  { %24 = vsyncpa [#allocation13], 0  ;;  %s1237_s1 = smov [#allocation8]   ;;  %s1161_s9 = scalar_lea.hbm %s1627_s3, 336 }
  0x1c   :  { %s32_s30 = sshll.u32 %s1237_s1, 4  ;;  %p1162_p10 = scmp.ne.s32.totalorder %s1627_s3, %s1161_s9  ;;  %s33_s30 = int_to_ptr.vmem [resolvable:$true] %s32_s30 }
  0x1d   :  { %p1165_p11 = scmp.lt.u32.totalorder %s1161_s9, %s1627_s3 }
  0x1f   :  { %p1167_p12 = pnand %p1165_p11, %p1162_p10 }
  0x21   :  { %1170 = shalt.err (!%p1167_p12)
}
  0x22   :  { %s1171_s14 = scalar_lea.vmem %s33_s30, 336  ;;  %s1175_s15 = scalar_lea.vmem %s33_s30, 352 }
  0x23   :  { %p1172_p13 = scmp.ne.s32.totalorder %s33_s30, %s1171_s14  ;;  %p1176_p0 = scmp.lt.s32.totalorder %s33_s30, %s33_s30 }
  0x24   :  { %p1177_p1 = scmp.lt.s32.totalorder %s1175_s15, %s1171_s14 }
  0x26   :  { %p1178_p2 = por %p1177_p1, %p1176_p0 }
  0x28   :  { %p1179_p3 = pnand %p1178_p2, %p1172_p13 }
  0x2a   :  { %1182 = shalt.err (!%p1179_p3)
}
  0x2b   :  { %s1238_s16 = smov 16   ;;  %s1239_s17 = smov 1  }
  0x2c   :  { %38 = dma.hbm_to_vmem [thread:$0]  %s1627_s3, 336, %s33_s30, [#allocation9], %s1238_s16, %s1238_s16, %s1239_s17  }
  0x2d   :  { %1229 = dma.done.wait [#allocation9], 336  }
  0x2e   :  { %1230 = vsyncadd [#allocation9], 4294966960  ;;  %s45_s20 = sld [smem:[#allocation6]]  ;;  %v1240_v0 = vmov 0   ;;  %s1032_s22 = sld [smem:[#allocation7 + $0x1]]  ;;  %v425_v13 = vlaneseq  ;;  %vm576_vm0 = vcmask 1041409  }
  0x2f   :  { %s50_s21 = sld [smem:[#allocation7]]  ;;  %1116 = vset.pattern.permute.xlu0 %v1240_v0  ;;  %1117 = vset.pattern.permute.xlu1 %v1240_v0  ;;  %s1033_s23 = sld [smem:[#allocation7 + $0x2]]  ;;  %v1241_v14 = vmov 1966171168   ;;  %vm578_vm1 = vcmask 1042434   ;;  %vm580_vm2 = vcmask 1043459  }
  0x30   :  { %s1034_s24 = sld [smem:[#allocation7 + $0x3]]  ;;  %s1035_s25 = sld [smem:[#allocation7 + $0x4]]  ;;  %v423_v15 = vunpack.c.l.s4 %v1241_v14  ;;  %v1347_v19 = vshrl.u32 %v425_v13, 7  ;;  %vm582_vm3 = vcmask 1044484   ;;  %vm584_vm4 = vcmask 1045509  }
  0x31   :  { %s1036_s26 = sld [smem:[#allocation7 + $0x5]]  ;;  %s1037_s27 = sld [smem:[#allocation7 + $0x6]]  ;;  %vm586_vm5 = vcmask 1046534   ;;  %vm588_vm6 = vcmask 1047559   ;;  %vm591_vm7 = vcmask 64512   ;;  %vm903_vm10 = vcmask 7168  }
  0x32   :  { %s1298_s28 = sld [smem:[#allocation7 + $0x7]]  ;;  %s1300_s29 = sld [smem:[#allocation6 + $0x1]]  ;;  %v424_v22 = vunpack.c.0.s8 %v423_v15  ;;  %v1375_v33 = vsub.s32 0, %v1347_v19  ;;  %vm898_vm9 = vcmp.lt.s32.totalorder %v1347_v19, 2  ;;  %vm919_vm11 = vcmask 0  }
  0x33   :  { %s1302_s0 = sld [smem:[#allocation6 + $0x2]]  ;;  %s1304_s3 = sld [smem:[#allocation6 + $0x3]] }
  0x34   :  { %s46_s7 = scalar_lea.vmem %s1626_s2, %s45_s20  ;;  %s56_s9 = scalar_lea.vmem [#allocation8], %s1032_s22  ;;  %v1356_v30 = vsub.s32 %v424_v22, %v1347_v19 }
  0x35   :  { %v47_v1 = vld [vmem:[%s46_s7] sm:$0x1]  ;;  %s51_s8 = scalar_lea.vmem [#allocation8], %s50_s21  ;;  %s61_s10 = scalar_lea.vmem [#allocation8], %s1033_s23 }
  0x36   :  { %v52_v2 = vld [vmem:[%s51_s8] sm:$0x1]  ;;  %48 = vst [vmem:[#allocation2] sm:$0x1] %v47_v1  ;;  %s66_s11 = scalar_lea.vmem [#allocation8], %s1034_s24  ;;  %s71_s12 = scalar_lea.vmem [#allocation8], %s1035_s25 }
  0x37   :  { %53 = vst [vmem:[#allocation3] sm:$0x1] %v52_v2  ;;  %v57_v3 = vld [vmem:[%s56_s9] sm:$0x1]  ;;  %s76_s13 = scalar_lea.vmem [#allocation8], %s1036_s26  ;;  %s81_s14 = scalar_lea.vmem [#allocation8], %s1037_s27 }
  0x38   :  { %v62_v4 = vld [vmem:[%s61_s10] sm:$0x1]  ;;  %58 = vst [vmem:[#allocation3 + $0x1] sm:$0x1] %v57_v3  ;;  %s91_s17 = scalar_lea.vmem %s1626_s2, %s1300_s29  ;;  %s86_s18 = scalar_lea.vmem [#allocation8], %s1298_s28 }
  0x39   :  { %63 = vst [vmem:[#allocation3 + $0x2] sm:$0x1] %v62_v4  ;;  %v67_v5 = vld [vmem:[%s66_s11] sm:$0x1]  ;;  %s137_s21 = scalar_lea.vmem %s1626_s2, %s1302_s0  ;;  %s183_s24 = scalar_lea.vmem %s1626_s2, %s1304_s3 }
  0x3a   :  { %v72_v6 = vld [vmem:[%s71_s12] sm:$0x1]  ;;  %68 = vst [vmem:[#allocation3 + $0x3] sm:$0x1] %v67_v5  ;;  %s1066_s25 = sld [smem:[#allocation6 + $0x4]]  ;;  %s1075_s26 = sld [smem:[#allocation6 + $0x5]] }
  0x3b   :  { %73 = vst [vmem:[#allocation3 + $0x4] sm:$0x1] %v72_v6  ;;  %v77_v7 = vld [vmem:[%s76_s13] sm:$0x1]  ;;  %s1084_s27 = sld [smem:[#allocation6 + $0x6]]  ;;  %s1093_s28 = sld [smem:[#allocation6 + $0x7]] }
  0x3c   :  { %v82_v8 = vld [vmem:[%s81_s14] sm:$0x1]  ;;  %78 = vst [vmem:[#allocation3 + $0x5] sm:$0x1] %v77_v7  ;;  %s1049_s29 = sld [smem:[#allocation7 + $0x10]]  ;;  %s1050_s1 = sld [smem:[#allocation7 + $0x11]] }
  0x3d   :  { %83 = vst [vmem:[#allocation3 + $0x6] sm:$0x1] %v82_v8  ;;  %v87_v9 = vld [vmem:[%s86_s18] sm:$0x1]  ;;  %s1322_s30 = sld [smem:[#allocation7 + $0x12]]  ;;  %s1324_s0 = sld [smem:[#allocation7 + $0x13]] }
  0x3e   :  { %v92_v10 = vld [vmem:[%s91_s17] sm:$0x1]  ;;  %88 = vst [vmem:[#allocation3 + $0x7] sm:$0x1] %v87_v9  ;;  %s1326_s7 = sld [smem:[#allocation7 + $0x14]]  ;;  %s1328_s3 = sld [smem:[#allocation7 + $0x15]] }
  0x3f   :  { %93 = vst [vmem:[#allocation2 + $0x1] sm:$0x1] %v92_v10  ;;  %v138_v11 = vld [vmem:[%s137_s21] sm:$0x1]  ;;  %s1330_s8 = sld [smem:[#allocation7 + $0x16]]  ;;  %s1335_s12 = sld [smem:[#allocation7 + $0x17]] }
  0x40   :  { %v184_v12 = vld [vmem:[%s183_s24] sm:$0x1]  ;;  %139 = vst [vmem:[#allocation2 + $0x2] sm:$0x1] %v138_v11  ;;  %s229_s11 = scalar_lea.vmem %s1626_s2, %s1066_s25  ;;  %s275_s15 = scalar_lea.vmem %s1626_s2, %s1075_s26 }
  0x41   :  { %185 = vst [vmem:[#allocation2 + $0x3] sm:$0x1] %v184_v12  ;;  %v230_v16 = vld [vmem:[%s229_s11] sm:$0x1]  ;;  %s321_s18 = scalar_lea.vmem %s1626_s2, %s1084_s27  ;;  %s367_s21 = scalar_lea.vmem %s1626_s2, %s1093_s28 }
  0x42   :  { %231 = vst [vmem:[#allocation2 + $0x4] sm:$0x1] %v230_v16  ;;  %v276_v17 = vld [vmem:[%s275_s15] sm:$0x1]  ;;  %s142_s22 = scalar_lea.vmem [#allocation8], %s1049_s29  ;;  %s148_s23 = scalar_lea.vmem [#allocation8], %s1050_s1 }
  0x43   :  { %v322_v18 = vld [vmem:[%s321_s18] sm:$0x1]  ;;  %277 = vst [vmem:[#allocation2 + $0x5] sm:$0x1] %v276_v17  ;;  %s153_s24 = scalar_lea.vmem [#allocation8], %s1322_s30  ;;  %s158_s2 = scalar_lea.vmem [#allocation8], %s1324_s0 }
  0x44   :  { %323 = vst [vmem:[#allocation2 + $0x6] sm:$0x1] %v322_v18  ;;  %v368_v20 = vld [vmem:[%s367_s21] sm:$0x1]  ;;  %s163_s25 = scalar_lea.vmem [#allocation8], %s1326_s7  ;;  %s168_s26 = scalar_lea.vmem [#allocation8], %s1328_s3 }
  0x45   :  { %v143_v21 = vld [vmem:[%s142_s22] sm:$0x1]  ;;  %369 = vst [vmem:[#allocation2 + $0x7] sm:$0x1] %v368_v20  ;;  %s173_s27 = scalar_lea.vmem [#allocation8], %s1330_s8  ;;  %s178_s28 = scalar_lea.vmem [#allocation8], %s1335_s12 }
  0x46   :  { %145 = vst [vmem:[#allocation3 + $0x10] sm:$0x1] %v143_v21  ;;  %v149_v23 = vld [vmem:[%s148_s23] sm:$0x1]  ;;  %s1040_s29 = sld [smem:[#allocation7 + $0x8]]  ;;  %s1041_s1 = sld [smem:[#allocation7 + $0x9]] }
  0x47   :  { %v154_v24 = vld [vmem:[%s153_s24] sm:$0x1]  ;;  %150 = vst [vmem:[#allocation3 + $0x11] sm:$0x1] %v149_v23  ;;  %s1042_s30 = sld [smem:[#allocation7 + $0xa]]  ;;  %s1043_s0 = sld [smem:[#allocation7 + $0xb]] }
  0x48   :  { %155 = vst [vmem:[#allocation3 + $0x12] sm:$0x1] %v154_v24  ;;  %v159_v25 = vld [vmem:[%s158_s2] sm:$0x1]  ;;  %s1358_s7 = sld [smem:[#allocation7 + $0xc]]  ;;  %s1360_s9 = sld [smem:[#allocation7 + $0xd]] }
  0x49   :  { %v164_v26 = vld [vmem:[%s163_s25] sm:$0x1]  ;;  %160 = vst [vmem:[#allocation3 + $0x13] sm:$0x1] %v159_v25  ;;  %s1362_s3 = sld [smem:[#allocation7 + $0xe]]  ;;  %s1364_s8 = sld [smem:[#allocation7 + $0xf]] }
  0x4a   :  { %165 = vst [vmem:[#allocation3 + $0x14] sm:$0x1] %v164_v26  ;;  %v169_v27 = vld [vmem:[%s168_s26] sm:$0x1]  ;;  %s1368_s10 = sld [smem:[#allocation7 + $0x18]]  ;;  %s1370_s11 = sld [smem:[#allocation7 + $0x19]] }
  0x4b   :  { %v174_v28 = vld [vmem:[%s173_s27] sm:$0x1]  ;;  %170 = vst [vmem:[#allocation3 + $0x15] sm:$0x1] %v169_v27  ;;  %s1377_s12 = sld [smem:[#allocation7 + $0x1a]]  ;;  %s1379_s13 = sld [smem:[#allocation7 + $0x1b]] }
  0x4c   :  { %175 = vst [vmem:[#allocation3 + $0x16] sm:$0x1] %v174_v28  ;;  %v179_v29 = vld [vmem:[%s178_s28] sm:$0x1]  ;;  %s96_s14 = scalar_lea.vmem [#allocation8], %s1040_s29  ;;  %s102_s15 = scalar_lea.vmem [#allocation8], %s1041_s1 }
  0x4d   :  { %180 = vst [vmem:[#allocation3 + $0x17] sm:$0x1] %v179_v29  ;;  %v1366_v31 = vld [vmem:[#allocation2] sm:$0xff]  ;;  %v412_v37 = vld [vmem:[#allocation3] sm:$0xff]  ;;  %s107_s16 = scalar_lea.vmem [#allocation8], %s1042_s30  ;;  %s112_s17 = scalar_lea.vmem [#allocation8], %s1043_s0 }
  0x4e   :  { %v428_v32 = vrot.slane %v1366_v31, %v1356_v30  ;;  %v97_v35 = vld [vmem:[%s96_s14] sm:$0x1]  ;;  %s117_s18 = scalar_lea.vmem [#allocation8], %s1358_s7  ;;  %s122_s19 = scalar_lea.vmem [#allocation8], %s1360_s9  ;;  %v421_v57 = vcombine.high %v1366_v31, %v1366_v31 }
  0x4f   :  { %v103_v36 = vld [vmem:[%s102_s15] sm:$0x1]  ;;  %99 = vst [vmem:[#allocation3 + $0x8] sm:$0x1] %v97_v35  ;;  %s127_s20 = scalar_lea.vmem [#allocation8], %s1362_s3  ;;  %s132_s21 = scalar_lea.vmem [#allocation8], %s1364_s8 }
  0x50   :  { %v444_v34 = vrot.slane %v428_v32, %v1356_v30  ;;  %104 = vst [vmem:[#allocation3 + $0x9] sm:$0x1] %v103_v36  ;;  %v108_v38 = vld [vmem:[%s107_s16] sm:$0x1]  ;;  %v436_v40 = vcombine.high %v428_v32, %v428_v32  ;;  %s188_s22 = scalar_lea.vmem [#allocation8], %s1368_s10  ;;  %s194_s23 = scalar_lea.vmem [#allocation8], %s1370_s11  ;;  %v1414_v3 = vrot.slane %v421_v57, %v1356_v30 }
  0x51   :  { %v113_v39 = vld [vmem:[%s112_s17] sm:$0x1]  ;;  %109 = vst [vmem:[#allocation3 + $0xa] sm:$0x1] %v108_v38  ;;  %s199_s24 = scalar_lea.vmem [#allocation8], %s1377_s12  ;;  %s204_s2 = scalar_lea.vmem [#allocation8], %s1379_s13 }
  0x52   :  { %v473_v41 = vrot.slane %v444_v34, %v1375_v33  ;;  %v466_v43 = vcombine.high %v444_v34, %v444_v34  ;;  %114 = vst [vmem:[#allocation3 + $0xb] sm:$0x1] %v113_v39  ;;  %v118_v44 = vld [vmem:[%s117_s18] sm:$0x1]  ;;  %v1390_v51 = vrot.slane %v436_v40, %v1356_v30  ;;  %s1062_s25 = sld [smem:[#allocation7 + $0x1c]]  ;;  %s1063_s26 = sld [smem:[#allocation7 + $0x1d]]  ;;  %v1425_v11 = vrot.slane %v1414_v3, %v1356_v30 }
  0x53   :  { %119 = vst [vmem:[#allocation3 + $0xc] sm:$0x1] %v118_v44  ;;  %v123_v45 = vld [vmem:[%s122_s19] sm:$0x1]  ;;  %s1064_s27 = sld [smem:[#allocation7 + $0x1e]]  ;;  %s1065_s28 = sld [smem:[#allocation7 + $0x1f]]  ;;  %v437_v21 = vcombine.high %v1414_v3, %v1414_v3 }
  0x54   :  { %v414_v42 = vld [vmem:[#allocation3 + $0x10] sm:$0xff]  ;;  %v128_v46 = vld [vmem:[%s127_s20] sm:$0x1]  ;;  %v510_v47 = vmul.f32 %v473_v41, %v412_v37  ;;  %v481_v48 = vrot.slane %v466_v43, %v1375_v33  ;;  %124 = vst [vmem:[#allocation3 + $0xd] sm:$0x1] %v123_v45  ;;  %s1067_s29 = sld [smem:[#allocation7 + $0x20]]  ;;  %v477_v56 = vrot.slane %v1390_v51, %v1375_v33  ;;  %v468_v0 = vcombine.high %v1390_v51, %v1390_v51 }
  0x55   :  { %129 = vst [vmem:[#allocation3 + $0xe] sm:$0x1] %v128_v46  ;;  %v133_v49 = vld [vmem:[%s132_s21] sm:$0x1]  ;;  %s1068_s1 = sld [smem:[#allocation7 + $0x21]]  ;;  %s1397_s30 = sld [smem:[#allocation7 + $0x22]]  ;;  %v489_v15 = vrot.slane %v1425_v11, %v1375_v33  ;;  %v1449_v28 = vrot.slane %v437_v21, %v1356_v30 }
  0x56   :  { %v189_v50 = vld [vmem:[%s188_s22] sm:$0x1]  ;;  %134 = vst [vmem:[#allocation3 + $0xf] sm:$0x1] %v133_v49  ;;  %518 = vadd.xlane.f32.xlu0 %v510_v47  ;;  %v512_v54 = vmul.f32 %v481_v48, %v414_v42  ;;  %s1399_s0 = sld [smem:[#allocation7 + $0x23]]  ;;  %s1401_s7 = sld [smem:[#allocation7 + $0x24]]  ;;  %v485_v10 = vrot.slane %v468_v0, %v1375_v33  ;;  %v467_v42 = vcombine.high %v1425_v11, %v1425_v11 }
  0x57   :  { %191 = vst [vmem:[#allocation3 + $0x18] sm:$0x1] %v189_v50  ;;  %v195_v52 = vld [vmem:[%s194_s23] sm:$0x1]  ;;  %s1403_s9 = sld [smem:[#allocation7 + $0x25]]  ;;  %s1407_s3 = sld [smem:[#allocation7 + $0x26]]  ;;  %v493_v30 = vrot.slane %v1449_v28, %v1375_v33  ;;  %v469_v51 = vcombine.high %v1449_v28, %v1449_v28 }
  0x58   :  { %v200_v53 = vld [vmem:[%s199_s24] sm:$0x1]  ;;  %196 = vst [vmem:[#allocation3 + $0x19] sm:$0x1] %v195_v52  ;;  %522 = vadd.xlane.f32.xlu1 %v512_v54  ;;  %s1409_s8 = sld [smem:[#allocation7 + $0x27]]  ;;  %s209_s10 = scalar_lea.vmem [#allocation8], %s1062_s25  ;;  %v497_v50 = vrot.slane %v467_v42, %v1375_v33 }
  0x59   :  { %201 = vst [vmem:[#allocation3 + $0x1a] sm:$0x1] %v200_v53  ;;  %v205_v55 = vld [vmem:[%s204_s2] sm:$0x1]  ;;  %s214_s11 = scalar_lea.vmem [#allocation8], %s1063_s26  ;;  %s219_s12 = scalar_lea.vmem [#allocation8], %s1064_s27  ;;  %v501_v54 = vrot.slane %v469_v51, %v1375_v33 }
  0x5a   :  { %206 = vst [vmem:[#allocation3 + $0x1b] sm:$0x1] %v205_v55  ;;  %v210_v60 = vld [vmem:[%s209_s10] sm:$0x1]  ;;  %s224_s13 = scalar_lea.vmem [#allocation8], %s1065_s28  ;;  %s234_s14 = scalar_lea.vmem [#allocation8], %s1067_s29 }
  0x5b   :  { %v215_v61 = vld [vmem:[%s214_s11] sm:$0x1]  ;;  %211 = vst [vmem:[#allocation3 + $0x1c] sm:$0x1] %v210_v60  ;;  %s240_s15 = scalar_lea.vmem [#allocation8], %s1068_s1  ;;  %s245_s16 = scalar_lea.vmem [#allocation8], %s1397_s30 }
  0x5c   :  { %216 = vst [vmem:[#allocation3 + $0x1d] sm:$0x1] %v215_v61  ;;  %v220_v62 = vld [vmem:[%s219_s12] sm:$0x1]  ;;  %s250_s17 = scalar_lea.vmem [#allocation8], %s1399_s0  ;;  %s255_s18 = scalar_lea.vmem [#allocation8], %s1401_s7 }
  0x5d   :  { %v413_v58 = vld [vmem:[#allocation3 + $0x8] sm:$0xff]  ;;  %v225_v63 = vld [vmem:[%s224_s13] sm:$0x1]  ;;  %221 = vst [vmem:[#allocation3 + $0x1e] sm:$0x1] %v220_v62  ;;  %s260_s19 = scalar_lea.vmem [#allocation8], %s1403_s9 }
  0x5e   :  { %v511_v59 = vmul.f32 %v477_v56, %v413_v58  ;;  %226 = vst [vmem:[#allocation3 + $0x1f] sm:$0x1] %v225_v63  ;;  %v235_v1 = vld [vmem:[%s234_s14] sm:$0x1]  ;;  %s265_s20 = scalar_lea.vmem [#allocation8], %s1407_s3  ;;  %s270_s21 = scalar_lea.vmem [#allocation8], %s1409_s8 }
  0x5f   :  { %v241_v2 = vld [vmem:[%s240_s15] sm:$0x1]  ;;  %237 = vst [vmem:[#allocation3 + $0x20] sm:$0x1] %v235_v1  ;;  %s1076_s22 = sld [smem:[#allocation7 + $0x28]]  ;;  %s1077_s23 = sld [smem:[#allocation7 + $0x29]] }
  0x60   :  { %520 = vadd.xlane.f32.xlu0 %v511_v59  ;;  %242 = vst [vmem:[#allocation3 + $0x21] sm:$0x1] %v241_v2  ;;  %v246_v4 = vld [vmem:[%s245_s16] sm:$0x1]  ;;  %s1078_s24 = sld [smem:[#allocation7 + $0x2a]]  ;;  %s1079_s2 = sld [smem:[#allocation7 + $0x2b]] }
  0x61   :  { %v251_v5 = vld [vmem:[%s250_s17] sm:$0x1]  ;;  %247 = vst [vmem:[#allocation3 + $0x22] sm:$0x1] %v246_v4  ;;  %s1080_s25 = sld [smem:[#allocation7 + $0x2c]]  ;;  %s1427_s26 = sld [smem:[#allocation7 + $0x2d]] }
  0x62   :  { %252 = vst [vmem:[#allocation3 + $0x23] sm:$0x1] %v251_v5  ;;  %v256_v6 = vld [vmem:[%s255_s18] sm:$0x1]  ;;  %s1429_s27 = sld [smem:[#allocation7 + $0x2e]]  ;;  %s1431_s28 = sld [smem:[#allocation7 + $0x2f]] }
  0x63   :  { %v261_v7 = vld [vmem:[%s260_s19] sm:$0x1]  ;;  %257 = vst [vmem:[#allocation3 + $0x24] sm:$0x1] %v256_v6  ;;  %s1433_s29 = sld [smem:[#allocation7 + $0x30]]  ;;  %s1437_s1 = sld [smem:[#allocation7 + $0x31]] }
  0x64   :  { %262 = vst [vmem:[#allocation3 + $0x25] sm:$0x1] %v261_v7  ;;  %v266_v8 = vld [vmem:[%s265_s20] sm:$0x1]  ;;  %s1439_s30 = sld [smem:[#allocation7 + $0x32]]  ;;  %s1441_s0 = sld [smem:[#allocation7 + $0x33]] }
  0x65   :  { %v271_v9 = vld [vmem:[%s270_s21] sm:$0x1]  ;;  %267 = vst [vmem:[#allocation3 + $0x26] sm:$0x1] %v266_v8  ;;  %s280_s7 = scalar_lea.vmem [#allocation8], %s1076_s22  ;;  %s286_s9 = scalar_lea.vmem [#allocation8], %s1077_s23 }
  0x66   :  { %272 = vst [vmem:[#allocation3 + $0x27] sm:$0x1] %v271_v9  ;;  %v415_v12 = vld [vmem:[#allocation3 + $0x18] sm:$0xff]  ;;  %s291_s3 = scalar_lea.vmem [#allocation8], %s1078_s24  ;;  %s296_s8 = scalar_lea.vmem [#allocation8], %s1079_s2  ;;  %v543_v59 = vand.u32 127, %v425_v13 }
  0x67   :  { %v513_v14 = vmul.f32 %v485_v10, %v415_v12  ;;  %v281_v16 = vld [vmem:[%s280_s7] sm:$0x1]  ;;  %s301_s10 = scalar_lea.vmem [#allocation8], %s1080_s25  ;;  %s306_s11 = scalar_lea.vmem [#allocation8], %s1427_s26 }
  0x68   :  { %283 = vst [vmem:[#allocation3 + $0x28] sm:$0x1] %v281_v16  ;;  %v287_v18 = vld [vmem:[%s286_s9] sm:$0x1]  ;;  %s311_s12 = scalar_lea.vmem [#allocation8], %s1429_s27  ;;  %s316_s13 = scalar_lea.vmem [#allocation8], %s1431_s28  ;;  %v1489_v62 = vsub.s32 %v543_v59, %v1347_v19 }
  0x69   :  { %524 = vadd.xlane.f32.xlu1 %v513_v14  ;;  %v292_v20 = vld [vmem:[%s291_s3] sm:$0x1]  ;;  %288 = vst [vmem:[#allocation3 + $0x29] sm:$0x1] %v287_v18  ;;  %s326_s14 = scalar_lea.vmem [#allocation8], %s1433_s29  ;;  %s332_s15 = scalar_lea.vmem [#allocation8], %s1437_s1 }
  0x6a   :  { %293 = vst [vmem:[#allocation3 + $0x2a] sm:$0x1] %v292_v20  ;;  %v297_v23 = vld [vmem:[%s296_s8] sm:$0x1]  ;;  %s337_s16 = scalar_lea.vmem [#allocation8], %s1439_s30  ;;  %s342_s17 = scalar_lea.vmem [#allocation8], %s1441_s0 }
  0x6b   :  { %298 = vst [vmem:[#allocation3 + $0x2b] sm:$0x1] %v297_v23  ;;  %v302_v24 = vld [vmem:[%s301_s10] sm:$0x1]  ;;  %s1089_s18 = sld [smem:[#allocation7 + $0x34]]  ;;  %s1090_s19 = sld [smem:[#allocation7 + $0x35]] }
  0x6c   :  { %v307_v25 = vld [vmem:[%s306_s11] sm:$0x1]  ;;  %303 = vst [vmem:[#allocation3 + $0x2c] sm:$0x1] %v302_v24  ;;  %s1091_s20 = sld [smem:[#allocation7 + $0x36]]  ;;  %s1092_s21 = sld [smem:[#allocation7 + $0x37]] }
  0x6d   :  { %v416_v17 = vld [vmem:[#allocation3 + $0x20] sm:$0xff]  ;;  %308 = vst [vmem:[#allocation3 + $0x2d] sm:$0x1] %v307_v25  ;;  %v312_v26 = vld [vmem:[%s311_s12] sm:$0x1]  ;;  %s1094_s22 = sld [smem:[#allocation7 + $0x38]] }
  0x6e   :  { %v514_v22 = vmul.f32 %v489_v15, %v416_v17  ;;  %v317_v27 = vld [vmem:[%s316_s13] sm:$0x1]  ;;  %313 = vst [vmem:[#allocation3 + $0x2e] sm:$0x1] %v312_v26  ;;  %s1095_s23 = sld [smem:[#allocation7 + $0x39]]  ;;  %s1096_s24 = sld [smem:[#allocation7 + $0x3a]] }
  0x6f   :  { %318 = vst [vmem:[#allocation3 + $0x2f] sm:$0x1] %v317_v27  ;;  %v327_v29 = vld [vmem:[%s326_s14] sm:$0x1]  ;;  %s1457_s2 = sld [smem:[#allocation7 + $0x3b]]  ;;  %s1459_s25 = sld [smem:[#allocation7 + $0x3c]] }
  0x70   :  { %526 = vadd.xlane.f32.xlu0 %v514_v22  ;;  %v333_v31 = vld [vmem:[%s332_s15] sm:$0x1]  ;;  %329 = vst [vmem:[#allocation3 + $0x30] sm:$0x1] %v327_v29  ;;  %s1461_s26 = sld [smem:[#allocation7 + $0x3d]]  ;;  %s1463_s27 = sld [smem:[#allocation7 + $0x3e]] }
  0x71   :  { %334 = vst [vmem:[#allocation3 + $0x31] sm:$0x1] %v333_v31  ;;  %v338_v32 = vld [vmem:[%s337_s16] sm:$0x1]  ;;  %s1465_s28 = sld [smem:[#allocation7 + $0x3f]]  ;;  %s347_s29 = scalar_lea.vmem [#allocation8], %s1089_s18 }
  0x72   :  { %v343_v34 = vld [vmem:[%s342_s17] sm:$0x1]  ;;  %339 = vst [vmem:[#allocation3 + $0x32] sm:$0x1] %v338_v32  ;;  %s352_s1 = scalar_lea.vmem [#allocation8], %s1090_s19  ;;  %s357_s30 = scalar_lea.vmem [#allocation8], %s1091_s20 }
  0x73   :  { %344 = vst [vmem:[#allocation3 + $0x33] sm:$0x1] %v343_v34  ;;  %v348_v37 = vld [vmem:[%s347_s29] sm:$0x1]  ;;  %s362_s0 = scalar_lea.vmem [#allocation8], %s1092_s21  ;;  %s372_s7 = scalar_lea.vmem [#allocation8], %s1094_s22 }
  0x74   :  { %349 = vst [vmem:[#allocation3 + $0x34] sm:$0x1] %v348_v37  ;;  %v353_v38 = vld [vmem:[%s352_s1] sm:$0x1]  ;;  %s378_s9 = scalar_lea.vmem [#allocation8], %s1095_s23  ;;  %s383_s3 = scalar_lea.vmem [#allocation8], %s1096_s24 }
  0x75   :  { %v358_v39 = vld [vmem:[%s357_s30] sm:$0x1]  ;;  %354 = vst [vmem:[#allocation3 + $0x35] sm:$0x1] %v353_v38  ;;  %s388_s8 = scalar_lea.vmem [#allocation8], %s1457_s2  ;;  %s393_s10 = scalar_lea.vmem [#allocation8], %s1459_s25 }
  0x76   :  { %v417_v35 = vld [vmem:[#allocation3 + $0x28] sm:$0xff]  ;;  %359 = vst [vmem:[#allocation3 + $0x36] sm:$0x1] %v358_v39  ;;  %v363_v40 = vld [vmem:[%s362_s0] sm:$0x1]  ;;  %s398_s11 = scalar_lea.vmem [#allocation8], %s1461_s26 }
  0x77   :  { %v515_v36 = vmul.f32 %v493_v30, %v417_v35  ;;  %v373_v41 = vld [vmem:[%s372_s7] sm:$0x1]  ;;  %364 = vst [vmem:[#allocation3 + $0x37] sm:$0x1] %v363_v40  ;;  %s403_s12 = scalar_lea.vmem [#allocation8], %s1463_s27  ;;  %s408_s13 = scalar_lea.vmem [#allocation8], %s1465_s28 }
  0x78   :  { %375 = vst [vmem:[#allocation3 + $0x38] sm:$0x1] %v373_v41  ;;  %v379_v43 = vld [vmem:[%s378_s9] sm:$0x1]  ;;  %v627_v18 = vsub.s32 7, %v1347_v19  ;;  %v1242_v22 = vmov 0.0  }
  0x79   :  { %528 = vadd.xlane.f32.xlu1 %v515_v36  ;;  %v384_v44 = vld [vmem:[%s383_s3] sm:$0x1]  ;;  %380 = vst [vmem:[#allocation3 + $0x39] sm:$0x1] %v379_v43  ;;  %v603_v26 = vsub.s32 1, %v1347_v19  ;;  %v607_v29 = vsub.s32 2, %v1347_v19 }
  0x7a   :  { %385 = vst [vmem:[#allocation3 + $0x3a] sm:$0x1] %v384_v44  ;;  %v389_v45 = vld [vmem:[%s388_s8] sm:$0x1]  ;;  %v611_v32 = vsub.s32 3, %v1347_v19  ;;  %v615_v30 = vsub.s32 4, %v1347_v19 }
  0x7b   :  { %v394_v46 = vld [vmem:[%s393_s10] sm:$0x1]  ;;  %390 = vst [vmem:[#allocation3 + $0x3b] sm:$0x1] %v389_v45  ;;  %v619_v36 = vsub.s32 5, %v1347_v19  ;;  %v623_v38 = vsub.s32 6, %v1347_v19 }
  0x7c   :  { %395 = vst [vmem:[#allocation3 + $0x3c] sm:$0x1] %v394_v46  ;;  %v399_v47 = vld [vmem:[%s398_s11] sm:$0x1]  ;;  %920 = vst.msk [vmem:[#allocation4] sm:$0x1] %vm919_vm11, %v1242_v22 }
  0x7d   :  { %v404_v48 = vld [vmem:[%s403_s12] sm:$0x1]  ;;  %400 = vst [vmem:[#allocation3 + $0x3d] sm:$0x1] %v399_v47 }
  0x7e   :  { %405 = vst [vmem:[#allocation3 + $0x3e] sm:$0x1] %v404_v48  ;;  %v409_v49 = vld [vmem:[%s408_s13] sm:$0x1]  ;;  %v418_v52 = vld [vmem:[#allocation3 + $0x30] sm:$0xff] }
  0x7f   :  { %410 = vst [vmem:[#allocation3 + $0x3f] sm:$0x1] %v409_v49  ;;  %v516_v53 = vmul.f32 %v497_v50, %v418_v52  ;;  %v739_v57 = vld [vmem:[%s1628_s4] sm:$0xff]  ;;  %s1243_s4 = smov [#allocation12]  }
  0x80   :  { %s947_s16 = sshll.u32 %s1243_s4, 4  ;;  %s948_s16 = int_to_ptr.vmem [resolvable:$true] %s947_s16 }
  0x81   :  { %530 = vadd.xlane.f32.xlu0 %v516_v53  ;;  %s1183_s17 = scalar_lea.vmem %s948_s16, 128  ;;  %p1188_p5 = scmp.lt.s32.totalorder %s948_s16, %s948_s16 }
  0x82   :  { %p1184_p4 = scmp.ne.s32.totalorder %s948_s16, %s1183_s17  ;;  %p1189_p6 = scmp.lt.s32.totalorder %s1183_s17, %s1183_s17 }
  0x84   :  { %p1190_p7 = por %p1189_p6, %p1188_p5 }
  0x86   :  { %v419_v55 = vld [vmem:[#allocation3 + $0x38] sm:$0xff]  ;;  %p1191_p8 = pnand %p1190_p7, %p1184_p4 }
  0x87   :  { %v517_v56 = vmul.f32 %v501_v54, %v419_v55 }
  0x89   :  { %532 = vadd.xlane.f32.xlu1 %v517_v56 }
  0x97   :  { %741 = vperm.xlu0 %1116, %v739_v57  }
  0xe3   :  { %v1481_v58 = vpop.xlane.xlu0 %518 }
  0xe4   :  { %v547_v0 = vrot.slane %v1481_v58, %v1489_v62 }
  0xe5   :  { %v1484_v60 = vpop.xlane.xlu1 %522 }
  0xe6   :  { %v555_v1 = vrot.slane %v1484_v60, %v1489_v62 }
  0xed   :  { %v1486_v61 = vpop.xlane.xlu0 %520 }
  0xee   :  { %v551_v63 = vrot.slane %v1486_v61, %v1489_v62 }
  0xf0   :  { %v577_v13 = vsel %vm576_vm0, %v551_v63, %v547_v0 }
  0xf1   :  { %v579_v5 = vsel %vm578_vm1, %v555_v1, %v577_v13 }
  0xf6   :  { %v1497_v2 = vpop.xlane.xlu1 %524 }
  0xf7   :  { %v559_v3 = vrot.slane %v1497_v2, %v1489_v62 }
  0xf9   :  { %v581_v8 = vsel %vm580_vm2, %v559_v3, %v579_v5 }
  0xfd   :  { %v1502_v4 = vpop.xlane.xlu0 %526 }
  0xfe   :  { %v563_v6 = vrot.slane %v1502_v4, %v1489_v62 }
 0x100   :  { %v583_v10 = vsel %vm582_vm3, %v563_v6, %v581_v8 }
 0x106   :  { %v1507_v7 = vpop.xlane.xlu1 %528 }
 0x107   :  { %v567_v9 = vrot.slane %v1507_v7, %v1489_v62 }
 0x109   :  { %v585_v14 = vsel %vm584_vm4, %v567_v9, %v583_v10 }
 0x10e   :  { %v1513_v11 = vpop.xlane.xlu0 %530 }
 0x10f   :  { %v571_v12 = vrot.slane %v1513_v11, %v1489_v62 }
 0x111   :  { %v587_v16 = vsel %vm586_vm5, %v571_v12, %v585_v14 }
 0x116   :  { %v1518_v15 = vpop.xlane.xlu1 %532  ;;  %v742_v21 = vpop.permute.xlu0 %741 }
 0x117   :  { %v575_v17 = vrot.slane %v1518_v15, %v1489_v62  ;;  %vm743_vm8 = vcmp.eq.s32.totalorder %v543_v59, %v742_v21 }
 0x118   :  { %v1102_v23 = vsel %vm743_vm8, 1.0, %v1242_v22 }
 0x119   :  { %v589_v20 = vsel %vm588_vm6, %v575_v17, %v587_v16  ;;  %v799_v24 = vrot.slane %v1102_v23, %v627_v18  ;;  %v750_v25 = vrot.slane %v1102_v23, %v1375_v33  ;;  %v757_v27 = vrot.slane %v1102_v23, %v603_v26 }
 0x11a   :  { %592 = vst.msk [vmem:[#allocation12] sm:$0xff] %vm591_vm7, %v589_v20  ;;  %v593_v28 = vsel %vm591_vm7, %v589_v20, -inf  ;;  %v764_v31 = vrot.slane %v1102_v23, %v607_v29  ;;  %v771_v34 = vrot.slane %v1102_v23, %v611_v32  ;;  %v778_v35 = vrot.slane %v1102_v23, %v615_v30 }
 0x11b   :  { %801 = vbcast.lane.b32.xlu0 %v799_v24, 256  ;;  %752 = vbcast.lane.b32.xlu1 %v750_v25, 256  ;;  %v785_v37 = vrot.slane %v1102_v23, %v619_v36  ;;  %v792_v39 = vrot.slane %v1102_v23, %v623_v38 }
 0x11f   :  { %759 = vbcast.lane.b32.xlu1 %v757_v27, 256 }
 0x143   :  { %594 = vmax.xlane.f32.xlu1 %v593_v28 }
 0x154   :  { %766 = vbcast.lane.b32.xlu1 %v764_v31, 256 }
 0x158   :  { %773 = vbcast.lane.b32.xlu1 %v771_v34, 256 }
 0x15c   :  { %780 = vbcast.lane.b32.xlu1 %v778_v35, 256 }
 0x160   :  { %787 = vbcast.lane.b32.xlu1 %v785_v37, 256 }
 0x164   :  { %794 = vbcast.lane.b32.xlu1 %v792_v39, 256 }
 0x18d   :  { %v753_v40 = vpop.permute.xlu1 %752  ;;  %v802_v31 = vpop.permute.xlu0 %801 }
 0x18e   :  { %v811_v25 = vmul.f32 %v753_v40, %v1481_v58 }
 0x191   :  { %v760_v41 = vpop.permute.xlu1 %759 }
 0x192   :  { %v812_v24 = vmul.f32 %v760_v41, %v1486_v61 }
 0x1d0   :  { %v1535_v42 = vpop.xlane.xlu1 %594 }
 0x1d1   :  { %v600_v43 = vrot.slane %v1535_v42, %v1375_v33  ;;  %v604_v44 = vrot.slane %v1535_v42, %v603_v26  ;;  %v608_v45 = vrot.slane %v1535_v42, %v607_v29  ;;  %v612_v46 = vrot.slane %v1535_v42, %v611_v32 }
 0x1d2   :  { %v620_v47 = vrot.slane %v1535_v42, %v619_v36  ;;  %v616_v51 = vrot.slane %v1535_v42, %v615_v30  ;;  %v628_v54 = vrot.slane %v1535_v42, %v627_v18  ;;  %v624_v57 = vrot.slane %v1535_v42, %v623_v38 }
 0x1d3   :  { %v638_v48 = vsub.f32 %v1486_v61, %v604_v44  ;;  %v637_v49 = vsub.f32 %v1481_v58, %v600_v43  ;;  %v640_v50 = vsub.f32 %v1497_v2, %v612_v46  ;;  %v639_v52 = vsub.f32 %v1484_v60, %v608_v45 }
 0x1d4   :  { %v642_v56 = vsub.f32 %v1507_v7, %v620_v47  ;;  %v641_v63 = vsub.f32 %v1502_v4, %v616_v51  ;;  %v644_v1 = vsub.f32 %v1518_v15, %v628_v54  ;;  %v643_v3 = vsub.f32 %v1513_v11, %v624_v57  ;;  %v767_v10 = vpop.permute.xlu1 %766 }
 0x1d5   :  { %v647_v53 = vmul.f32 1.442695, %v638_v48  ;;  %v645_v33 = vmul.f32 1.442695, %v637_v49  ;;  %v651_v55 = vmul.f32 1.442695, %v640_v50  ;;  %v813_v28 = vmul.f32 %v767_v10, %v1484_v60 }
 0x1d6   :  { %v649_v59 = vmul.f32 1.442695, %v639_v52  ;;  %v655_v0 = vmul.f32 1.442695, %v642_v56  ;;  %v653_v13 = vmul.f32 1.442695, %v641_v63  ;;  %v818_v61 = vmul.f32 %v802_v31, %v1518_v15 }
 0x1d7   :  { %1119 = vpow2.f32 %v647_v53  ;;  %v659_v5 = vmul.f32 1.442695, %v644_v1  ;;  %v657_v6 = vmul.f32 1.442695, %v643_v3 }
 0x1d8   :  { %1121 = vpow2.f32 %v645_v33  ;;  %v774_v16 = vpop.permute.xlu1 %773 }
 0x1d9   :  { %1123 = vpow2.f32 %v651_v55  ;;  %v814_v26 = vmul.f32 %v774_v16, %v1497_v2 }
 0x1da   :  { %1125 = vpow2.f32 %v649_v59 }
 0x1db   :  { %1127 = vpow2.f32 %v655_v0 }
 0x1dc   :  { %1129 = vpow2.f32 %v653_v13  ;;  %v781_v23 = vpop.permute.xlu1 %780 }
 0x1dd   :  { %1131 = vpow2.f32 %v659_v5  ;;  %v815_v32 = vmul.f32 %v781_v23, %v1502_v4 }
 0x1de   :  { %1133 = vpow2.f32 %v657_v6 }
 0x1e0   :  { %v788_v27 = vpop.permute.xlu1 %787 }
 0x1e1   :  { %v1120_v8 = vpop.eup %1119  ;;  %v816_v29 = vmul.f32 %v788_v27, %v1507_v7 }
 0x1e2   :  { %v1122_v9 = vpop.eup %1121  ;;  %673 = vperm.xlu0 %1116, %v1120_v8  }
 0x1e3   :  { %670 = vperm.xlu1 %1117, %v1122_v9   ;;  %v1124_v12 = vpop.eup %1123 }
 0x1e4   :  { %v1126_v14 = vpop.eup %1125  ;;  %v795_v34 = vpop.permute.xlu1 %794 }
 0x1e5   :  { %v1128_v17 = vpop.eup %1127  ;;  %v817_v58 = vmul.f32 %v795_v34, %v1513_v11 }
 0x1e6   :  { %679 = vperm.xlu0 %1116, %v1124_v12   ;;  %v1130_v18 = vpop.eup %1129 }
 0x1e7   :  { %676 = vperm.xlu1 %1117, %v1126_v14   ;;  %v1132_v20 = vpop.eup %1131 }
 0x1e8   :  { %v1134_v21 = vpop.eup %1133 }
 0x1ea   :  { %685 = vperm.xlu0 %1116, %v1128_v17  }
 0x1eb   :  { %682 = vperm.xlu1 %1117, %v1130_v18  }
 0x1ee   :  { %691 = vperm.xlu0 %1116, %v1132_v20  }
 0x1ef   :  { %688 = vperm.xlu1 %1117, %v1134_v21  }
 0x1f2   :  { %831 = vperm.xlu0 %1116, %v812_v24  }
 0x1f3   :  { %828 = vperm.xlu1 %1117, %v811_v25  }
 0x1f6   :  { %837 = vperm.xlu0 %1116, %v814_v26  }
 0x1f7   :  { %834 = vperm.xlu1 %1117, %v813_v28  }
 0x1fa   :  { %843 = vperm.xlu0 %1116, %v816_v29  }
 0x1fb   :  { %840 = vperm.xlu1 %1117, %v815_v32  }
 0x1fe   :  { %849 = vperm.xlu0 %1116, %v818_v61  }
 0x1ff   :  { %846 = vperm.xlu1 %1117, %v817_v58  }
 0x261   :  { %v674_v2 = vpop.permute.xlu0 %673 }
 0x262   :  { %v671_v30 = vpop.permute.xlu1 %670  ;;  %v700_v60 = vrot.slane %v674_v2, %v1489_v62 }
 0x263   :  { %v696_v35 = vrot.slane %v671_v30, %v1489_v62 }
 0x265   :  { %v680_v36 = vpop.permute.xlu0 %679  ;;  %v725_v4 = vsel %vm576_vm0, %v700_v60, %v696_v35 }
 0x266   :  { %v677_v7 = vpop.permute.xlu1 %676  ;;  %v708_v38 = vrot.slane %v680_v36, %v1489_v62 }
 0x267   :  { %v704_v37 = vrot.slane %v677_v7, %v1489_v62 }
 0x269   :  { %v726_v15 = vsel %vm578_vm1, %v704_v37, %v725_v4  ;;  %v686_v39 = vpop.permute.xlu0 %685 }
 0x26a   :  { %v683_v11 = vpop.permute.xlu1 %682  ;;  %v716_v41 = vrot.slane %v686_v39, %v1489_v62  ;;  %v727_v43 = vsel %vm580_vm2, %v708_v38, %v726_v15 }
 0x26b   :  { %v712_v40 = vrot.slane %v683_v11, %v1489_v62 }
 0x26d   :  { %v728_v44 = vsel %vm582_vm3, %v712_v40, %v727_v43  ;;  %v692_v45 = vpop.permute.xlu0 %691 }
 0x26e   :  { %v724_v46 = vrot.slane %v692_v45, %v1489_v62  ;;  %v689_v47 = vpop.permute.xlu1 %688  ;;  %v729_v49 = vsel %vm584_vm4, %v716_v41, %v728_v44 }
 0x26f   :  { %v720_v48 = vrot.slane %v689_v47, %v1489_v62 }
 0x271   :  { %v832_v50 = vpop.permute.xlu0 %831  ;;  %v730_v51 = vsel %vm586_vm5, %v720_v48, %v729_v49 }
 0x272   :  { %v829_v52 = vpop.permute.xlu1 %828  ;;  %v731_v53 = vsel %vm588_vm6, %v724_v46, %v730_v51  ;;  %v858_v54 = vrot.slane %v832_v50, %v1489_v62 }
 0x273   :  { %v733_v33 = vsel %vm591_vm7, %v731_v53, 0.0  ;;  %v854_v55 = vrot.slane %v829_v52, %v1489_v62 }
 0x274   :  { %734 = vadd.xlane.f32.xlu1 %v733_v33 }
 0x275   :  { %v838_v56 = vpop.permute.xlu0 %837  ;;  %v883_v63 = vsel %vm576_vm0, %v858_v54, %v854_v55 }
 0x276   :  { %v835_v57 = vpop.permute.xlu1 %834  ;;  %v866_v0 = vrot.slane %v838_v56, %v1489_v62 }
 0x277   :  { %v862_v59 = vrot.slane %v835_v57, %v1489_v62 }
 0x279   :  { %v884_v1 = vsel %vm578_vm1, %v862_v59, %v883_v63  ;;  %v844_v13 = vpop.permute.xlu0 %843 }
 0x27a   :  { %v841_v3 = vpop.permute.xlu1 %840  ;;  %v874_v6 = vrot.slane %v844_v13, %v1489_v62  ;;  %v885_v8 = vsel %vm580_vm2, %v866_v0, %v884_v1 }
 0x27b   :  { %v870_v5 = vrot.slane %v841_v3, %v1489_v62 }
 0x27d   :  { %v886_v9 = vsel %vm582_vm3, %v870_v5, %v885_v8  ;;  %v850_v10 = vpop.permute.xlu0 %849 }
 0x27e   :  { %v882_v12 = vrot.slane %v850_v10, %v1489_v62  ;;  %v847_v14 = vpop.permute.xlu1 %846  ;;  %v887_v17 = vsel %vm584_vm4, %v874_v6, %v886_v9 }
 0x27f   :  { %v878_v16 = vrot.slane %v847_v14, %v1489_v62  ;;  %v1103_v62 = vsel %vm898_vm9, 1.0, %v1242_v22 }
 0x281   :  { %v888_v18 = vsel %vm586_vm5, %v878_v16, %v887_v17 }
 0x282   :  { %v889_v20 = vsel %vm588_vm6, %v882_v12, %v888_v18 }
 0x283   :  { %v891_v21 = vsel %vm591_vm7, %v889_v20, 0.0 }
 0x284   :  { %892 = vadd.xlane.f32.xlu0 %v891_v21 }
 0x301   :  { %v735_v23 = vpop.xlane.xlu1 %734 }
 0x302   :  { %1135 = vlog2.f32 %v735_v23 }
 0x30c   :  { %v1136_v24 = vpop.eup %1135 }
 0x30d   :  { %v737_v25 = vmul.f32 0.6931472, %v1136_v24 }
 0x30f   :  { %v738_v26 = vadd.f32 %v737_v25, %v1535_v42 }
 0x311   :  { %v893_v27 = vpop.xlane.xlu0 %892 }
 0x312   :  { %v901_v28 = vsub.f32 %v738_v26, %v893_v27 }
 0x314   :  { %v902_v29 = vmul.f32 %v1103_v62, %v901_v28 }
 0x316   :  { %v904_v31 = vsel %vm903_vm10, %v902_v29, 0.0 }
 0x317   :  { %905 = vadd.xlane.f32.xlu0 %v904_v31 }
 0x318   :  { %1194 = shalt.err (!%p1191_p8)
}
 0x319   :  { %s1195_s20 = scalar_lea.hbm %s1630_s6, 128 }
 0x31a   :  { %p1196_p9 = scmp.ne.s32.totalorder %s1630_s6, %s1195_s20  ;;  %p1199_p10 = scmp.lt.u32.totalorder %s1195_s20, %s1630_s6 }
 0x31c   :  { %p1201_p11 = pnand %p1199_p10, %p1196_p9 }
 0x31e   :  { %1204 = shalt.err (!%p1201_p11)
}
 0x31f   :  { %950 = dma.vmem_to_hbm [thread:$0]  %s948_s16, 128, %s1630_s6, [#allocation13]   ;;  %v921_v2 = vld [vmem:[#allocation4] sm:$0x1] }
 0x320   :  { %s1244_s27 = smov [#allocation11]  }
 0x321   :  { %s937_s28 = sshll.u32 %s1244_s27, 4  ;;  %s938_s28 = int_to_ptr.vmem [resolvable:$true] %s937_s28 }
 0x322   :  { %s1205_s6 = scalar_lea.vmem %s938_s28, 16  ;;  %s1209_s29 = scalar_lea.vmem %s938_s28, 32 }
 0x323   :  { %p1206_p12 = scmp.ne.s32.totalorder %s938_s28, %s1205_s6  ;;  %p1210_p13 = scmp.lt.s32.totalorder %s938_s28, %s938_s28 }
 0x324   :  { %p1211_p0 = scmp.lt.s32.totalorder %s1209_s29, %s1205_s6 }
 0x326   :  { %p1212_p1 = por %p1211_p0, %p1210_p13 }
 0x328   :  { %p1213_p2 = pnand %p1212_p1, %p1206_p12 }
 0x3a4   :  { %v906_v19 = vpop.xlane.xlu0 %905 }
 0x3a5   :  { %v907_v22 = vrot.slane %v906_v19, 4 }
 0x3a7   :  { %v908_v42 = vadd.f32 %v907_v22, %v906_v19 }
 0x3a9   :  { %v909_v32 = vrot.slane %v908_v42, 2 }
 0x3ab   :  { %v910_v34 = vadd.f32 %v909_v32, %v908_v42 }
 0x3ad   :  { %v911_v61 = vrot.slane %v910_v34, 1 }
 0x3af   :  { %v912_v58 = vadd.f32 %v911_v61, %v910_v34 }
 0x3b1   :  { %1104 = vpush %v912_v58 }
 0x3e2   :  { %s1105_s26 = spop %1104 }
 0x3e3   :  { %v914_v30 = vstv %s1105_s26 }
 0x3e4   :  { %v922_v60 = vadd.f32 %v921_v2, %v914_v30 }
 0x3e6   :  { %924 = vst.msk [vmem:[#allocation4] sm:$0x1] %vm919_vm11, %v922_v60 }
 0x3ed   :  { %v928_v35 = vld [vmem:[#allocation4] sm:$0x1] }
 0x3ee   :  { %v929_v36 = vmul.f32 0.5, %v928_v35 }
 0x3f0   :  { %930 = vst.msk [vmem:[#allocation11] sm:$0x1] %vm919_vm11, %v929_v36 }
 0x3f1   :  { %1216 = shalt.err (!%p1213_p2)
}
 0x3f2   :  { %s1217_s0 = scalar_lea.hbm %s1629_s5, 16 }
 0x3f3   :  { %p1218_p3 = scmp.ne.s32.totalorder %s1629_s5, %s1217_s0  ;;  %p1221_p4 = scmp.lt.u32.totalorder %s1217_s0, %s1629_s5 }
 0x3f5   :  { %p1223_p5 = pnand %p1221_p4, %p1218_p3 }
 0x3f7   :  { %1226 = shalt.err (!%p1223_p5)
}
 0x3f8   :  { %940 = dma.vmem_to_hbm [thread:$0]  %s938_s28, 16, %s1629_s5, [#allocation10]  }
 0x3f9   :  { %1231 = dma.done.wait [#allocation10], 16  }
 0x3fa   :  { %1232 = vsyncadd [#allocation10], 4294967280 }
 0x3fb   :  { %1233 = dma.done.wait [#allocation13], 128  }
 0x3fc   :  { %1234 = vsyncadd [#allocation13], 4294967168 }
 0x3fd   :  { %957 = vsyncpa [#allocation9], 1 }
 0x3fe   :  { %958 = vsyncpa [#allocation10], 1 }
 0x3ff   :  { %959 = vsyncpa [#allocation13], 1 }

</bundles_post_ra>
